<compile_context>
chip_gen: v7x
topology: tpu7x:2x2x1
jax: 0.10.0
libtpu: 0.0.40
codegen_flags: <defaults>
</compile_context>

<pallas_src>
import functools

import numpy as np
import jax
import jax.numpy as jnp
from jax.experimental import pallas as pl
from jax.experimental.pallas import tpu as pltpu

# -------- model dims (from the PyTorch script) --------
class_num = 2
h_dim = 16
r_dim = 8
x_dim = 37
y_dim = 1
z_dim = 2
BN_EPS = 1e-5  # nn.BatchNorm1d default eps

_VMEM_SPEC = pl.BlockSpec(memory_space=pltpu.MemorySpace.VMEM)

# ---------------------------------------------------------------------------
# Parameter-slab layout (all row offsets are multiples of 8 -> aligned loads)
# ---------------------------------------------------------------------------
# slab1: width h_dim (16) — first-layer weights + BN (b1 / gamma / beta) rows
_S1_ENC_WX, _S1_ENC_WY = 0, 40          # (37,16), (1,16)
_S1_MU_W1, _S1_LV_W1 = 48, 56           # (8,16), (8,16)
_S1_DEC_WX, _S1_DEC_WZ = 64, 104        # (37,16), (2,16)
_S1_ENC_B1, _S1_ENC_G, _S1_ENC_BE = 112, 120, 128
_S1_MU_B1, _S1_MU_G, _S1_MU_BE = 136, 144, 152
_S1_LV_B1, _S1_LV_G, _S1_LV_BE = 160, 168, 176
_S1_DEC_B1, _S1_DEC_G, _S1_DEC_BE = 184, 192, 200
_S1_ROWS = 208

# slab2: width r_dim (8) — second-layer weights + biases
_S2_ENC_W2, _S2_ENC_B2 = 0, 16          # (16,8), (1,8)
_S2_MU_W2, _S2_MU_B2 = 24, 40           # (16,2), (1,2)
_S2_LV_W2, _S2_LV_B2 = 48, 64           # (16,2), (1,2)
_S2_DEC_W2, _S2_DEC_B2 = 72, 88         # (16,2), (1,2)
_S2_ROWS = 96


def pack_params(params):
    """Pack the 24 small parameter tensors into two lane-dense f32 slabs."""
    (w1_e, b1_e, g_e, be_e, w2_e, b2_e) = params["xy_to_r"]
    (w1_m, b1_m, g_m, be_m, w2_m, b2_m) = params["r_to_z_mu"]
    (w1_l, b1_l, g_l, be_l, w2_l, b2_l) = params["r_to_z_log_var"]
    (w1_d, b1_d, g_d, be_d, w2_d, b2_d) = params["xz_to_y"]

    def place(slab, row0, a):
        return slab.at[row0:row0 + a.shape[0], 0:a.shape[1]].set(a)

    slab1 = jnp.zeros((_S1_ROWS, h_dim), jnp.float32)
    slab1 = place(slab1, _S1_ENC_WX, w1_e[:x_dim, :])   # encoder W1, x part
    slab1 = place(slab1, _S1_ENC_WY, w1_e[x_dim:, :])   # encoder W1, y part
    slab1 = place(slab1, _S1_MU_W1, w1_m)
    slab1 = place(slab1, _S1_LV_W1, w1_l)
    slab1 = place(slab1, _S1_DEC_WX, w1_d[:x_dim, :])   # decoder W1, x part
    slab1 = place(slab1, _S1_DEC_WZ, w1_d[x_dim:, :])   # decoder W1, z part
    slab1 = place(slab1, _S1_ENC_B1, b1_e)
    slab1 = place(slab1, _S1_ENC_G, g_e)
    slab1 = place(slab1, _S1_ENC_BE, be_e)
    slab1 = place(slab1, _S1_MU_B1, b1_m)
    slab1 = place(slab1, _S1_MU_G, g_m)
    slab1 = place(slab1, _S1_MU_BE, be_m)
    slab1 = place(slab1, _S1_LV_B1, b1_l)
    slab1 = place(slab1, _S1_LV_G, g_l)
    slab1 = place(slab1, _S1_LV_BE, be_l)
    slab1 = place(slab1, _S1_DEC_B1, b1_d)
    slab1 = place(slab1, _S1_DEC_G, g_d)
    slab1 = place(slab1, _S1_DEC_BE, be_d)

    slab2 = jnp.zeros((_S2_ROWS, r_dim), jnp.float32)
    slab2 = place(slab2, _S2_ENC_W2, w2_e)
    slab2 = place(slab2, _S2_ENC_B2, b2_e)
    slab2 = place(slab2, _S2_MU_W2, w2_m)
    slab2 = place(slab2, _S2_MU_B2, b2_m)
    slab2 = place(slab2, _S2_LV_W2, w2_l)
    slab2 = place(slab2, _S2_LV_B2, b2_l)
    slab2 = place(slab2, _S2_DEC_W2, w2_d)
    slab2 = place(slab2, _S2_DEC_B2, b2_d)
    return slab1, slab2


# ---------------------------------------------------------------------------
# Fused kernel: context encode + target encode + decoder + losses
# ---------------------------------------------------------------------------
def fused_kernel(xc_ref, yc_ref, xt_ref, yt_ref, eps_ref, p1_ref, p2_ref,
                 out_ref, *, B, Nc, Nt):
    f32 = jnp.float32

    # ---- unpack parameter slabs (static 8-aligned row slices) ----
    enc_wx = p1_ref[_S1_ENC_WX:_S1_ENC_WX + x_dim, :]        # (37, 16)
    enc_wy = p1_ref[_S1_ENC_WY:_S1_ENC_WY + y_dim, :]        # (1, 16)
    mu_w1 = p1_ref[_S1_MU_W1:_S1_MU_W1 + r_dim, :]           # (8, 16)
    lv_w1 = p1_ref[_S1_LV_W1:_S1_LV_W1 + r_dim, :]           # (8, 16)
    dec_wx = p1_ref[_S1_DEC_WX:_S1_DEC_WX + x_dim, :]        # (37, 16)
    dec_wz = p1_ref[_S1_DEC_WZ:_S1_DEC_WZ + z_dim, :]        # (2, 16)

    enc_b1 = p1_ref[_S1_ENC_B1:_S1_ENC_B1 + 1, :]
    enc_g = p1_ref[_S1_ENC_G:_S1_ENC_G + 1, :]
    enc_be = p1_ref[_S1_ENC_BE:_S1_ENC_BE + 1, :]
    mu_b1 = p1_ref[_S1_MU_B1:_S1_MU_B1 + 1, :]
    mu_g = p1_ref[_S1_MU_G:_S1_MU_G + 1, :]
    mu_be = p1_ref[_S1_MU_BE:_S1_MU_BE + 1, :]
    lv_b1 = p1_ref[_S1_LV_B1:_S1_LV_B1 + 1, :]
    lv_g = p1_ref[_S1_LV_G:_S1_LV_G + 1, :]
    lv_be = p1_ref[_S1_LV_BE:_S1_LV_BE + 1, :]
    dec_b1 = p1_ref[_S1_DEC_B1:_S1_DEC_B1 + 1, :]
    dec_g = p1_ref[_S1_DEC_G:_S1_DEC_G + 1, :]
    dec_be = p1_ref[_S1_DEC_BE:_S1_DEC_BE + 1, :]

    enc_w2 = p2_ref[_S2_ENC_W2:_S2_ENC_W2 + h_dim, 0:r_dim]      # (16, 8)
    enc_b2 = p2_ref[_S2_ENC_B2:_S2_ENC_B2 + 1, 0:r_dim]          # (1, 8)
    mu_w2 = p2_ref[_S2_MU_W2:_S2_MU_W2 + h_dim, 0:z_dim]         # (16, 2)
    mu_b2 = p2_ref[_S2_MU_B2:_S2_MU_B2 + 1, 0:z_dim]
    lv_w2 = p2_ref[_S2_LV_W2:_S2_LV_W2 + h_dim, 0:z_dim]
    lv_b2 = p2_ref[_S2_LV_B2:_S2_LV_B2 + 1, 0:z_dim]
    dec_w2 = p2_ref[_S2_DEC_W2:_S2_DEC_W2 + h_dim, 0:class_num]  # (16, 2)
    dec_b2 = p2_ref[_S2_DEC_B2:_S2_DEC_B2 + 1, 0:class_num]

    def bn_relu(h, gamma, beta):
        # BatchNorm1d (train mode, biased batch stats) + ReLU.
        # E[h^2] - mu^2 keeps the two cross-sublane reductions independent.
        mu = jnp.mean(h, axis=0, keepdims=True)
        ex2 = jnp.mean(h * h, axis=0, keepdims=True)
        var = ex2 - mu * mu
        hn = (h - mu) * jax.lax.rsqrt(var + BN_EPS)
        return jnp.maximum(hn * gamma + beta, 0.0)

    def per_batch_mean(r, n_points):
        # agg[b, m] = 1/n_points  iff  m in [b*n_points, (b+1)*n_points)
        m_rows = B * n_points
        row = jax.lax.broadcasted_iota(jnp.int32, (B, m_rows), 0)
        col = jax.lax.broadcasted_iota(jnp.int32, (B, m_rows), 1)
        lo = row * n_points
        agg = jnp.where((col >= lo) & (col < lo + n_points),
                        f32(1.0 / n_points), f32(0.0))
        return jnp.dot(agg, r, preferred_element_type=f32)       # (B, r_dim)

    def encode(x, y, n_points):
        # xy_to_r: Linear(38->16) split into x-matmul + y broadcast (y_dim==1)
        h = jnp.dot(x, enc_wx, preferred_element_type=f32) + y * enc_wy + enc_b1
        r = jnp.dot(bn_relu(h, enc_g, enc_be), enc_w2,
                    preferred_element_type=f32) + enc_b2         # (M, r_dim)
        r_mean = per_batch_mean(r, n_points)                     # (B, r_dim)
        hm = jnp.dot(r_mean, mu_w1, preferred_element_type=f32) + mu_b1
        z_mu = jnp.dot(bn_relu(hm, mu_g, mu_be), mu_w2,
                       preferred_element_type=f32) + mu_b2       # (B, z_dim)
        hl = jnp.dot(r_mean, lv_w1, preferred_element_type=f32) + lv_b1
        z_lv = jnp.dot(bn_relu(hl, lv_g, lv_be), lv_w2,
                       preferred_element_type=f32) + lv_b2       # (B, z_dim)
        return z_mu, z_lv

    xc, yc = xc_ref[...], yc_ref[...]
    xt, yt = xt_ref[...], yt_ref[...]

    # BN statistics are per encoderNet call (as in PyTorch), so the two
    # encodes are traced separately but share the already-loaded weights.
    zc_mu, zc_lv = encode(xc, yc, Nc)
    zt_mu, zt_lv = encode(xt, yt, Nt)

    # KL( N(mu_t, std_t) || N(mu_c, std_c) ) summed, computed from log-vars.
    diff = zt_mu - zc_mu
    kl_el = 0.5 * (zc_lv - zt_lv
                   + (jnp.exp(zt_lv) + diff * diff) * jnp.exp(-zc_lv)
                   - 1.0)                                        # (B, z_dim)
    kl = jnp.sum(jnp.sum(kl_el, axis=0, keepdims=True),
                 axis=1, keepdims=True)                          # (1, 1)

    # reparametrize with the target stats; eps comes from the host PRNG.
    z = zt_mu + jnp.exp(0.5 * zt_lv) * eps_ref[...]              # (B, z_dim)

    # decoder xz_to_y on target points; z replicated per point in-kernel.
    Mt = B * Nt
    prow = jax.lax.broadcasted_iota(jnp.int32, (Mt, B), 0)       # point index
    pcol = jax.lax.broadcasted_iota(jnp.int32, (Mt, B), 1)       # batch index
    lo = pcol * Nt
    sel = jnp.where((prow >= lo) & (prow < lo + Nt), f32(1.0), f32(0.0))
    z_rep = jnp.dot(sel, z, preferred_element_type=f32)          # (Mt, z_dim)

    hd = (jnp.dot(xt, dec_wx, preferred_element_type=f32)
          + jnp.dot(z_rep, dec_wz, preferred_element_type=f32) + dec_b1)
    logits = jnp.dot(bn_relu(hd, dec_g, dec_be), dec_w2,
                     preferred_element_type=f32) + dec_b2        # (Mt, 2)

    # log-softmax over classes + in-kernel one-hot pick of the target class.
    mx = jnp.max(logits, axis=1, keepdims=True)
    lse = mx + jnp.log(jnp.sum(jnp.exp(logits - mx), axis=1, keepdims=True))
    log_prob = logits - lse                                      # (Mt, 2)
    cls = jax.lax.broadcasted_iota(jnp.int32, (Mt, class_num), 1).astype(f32)
    onehot = jnp.where(jnp.abs(cls - yt) < 0.5, f32(1.0), f32(0.0))
    picked = jnp.sum(log_prob * onehot, axis=1, keepdims=True)   # (Mt, 1)
    recon = -jnp.sum(picked, axis=0, keepdims=True) * f32(1.0 / Mt)  # (1, 1)

    # pack [recon, kl] into the single (1, 2) output without a concatenate.
    lane = jax.lax.broadcasted_iota(jnp.int32, (1, 2), 1)
    out_ref[...] = jnp.where(lane == 0, recon, kl)


# ---------------------------------------------------------------------------
# Wrapper (single pallas_call; all glue is cheap reshapes / packing under jit)
# ---------------------------------------------------------------------------
@jax.jit
def neural_process_train_forward(params, x_context, y_context,
                                 x_target, y_target, eps_key):
    """Forward pass in 'train' mode: returns (recon, kl) scalars."""
    B, Nc, _ = x_context.shape
    _, Nt, _ = x_target.shape

    slab1, slab2 = pack_params(params)
    eps = jax.random.normal(eps_key, (B, z_dim), jnp.float32)

    xc = x_context.reshape(B * Nc, x_dim).astype(jnp.float32)
    yc = y_context.reshape(B * Nc, y_dim).astype(jnp.float32)
    xt = x_target.reshape(B * Nt, x_dim).astype(jnp.float32)
    yt = y_target.reshape(B * Nt, y_dim).astype(jnp.float32)

    out = pl.pallas_call(
        functools.partial(fused_kernel, B=B, Nc=Nc, Nt=Nt),
        out_shape=jax.ShapeDtypeStruct((1, 2), jnp.float32),
        in_specs=[_VMEM_SPEC] * 7,
        out_specs=_VMEM_SPEC,
    )(xc, yc, xt, yt, eps, slab1, slab2)
    return out[0, 0], out[0, 1]


# TODO(synk): 'test' mode's Categorical(y_prob).sample() is stochastic
# sampling; it is not part of the default 'train' forward and would be plain
# jax.random.categorical on decoder log-probs, so it is not implemented here.


# ---------------------------------------------------------------------------
# Deterministic parameter init (PyTorch-default-like uniform bounds)
# ---------------------------------------------------------------------------
def init_params(key):
    def linear(k, fan_in, fan_out):
        kw, kb = jax.random.split(k)
        bound = 1.0 / np.sqrt(fan_in)
        w = jax.random.uniform(kw, (fan_in, fan_out), jnp.float32, -bound, bound)
        b = jax.random.uniform(kb, (1, fan_out), jnp.float32, -bound, bound)
        return w, b

    def mlp_block(k, d_in, d_hidden, d_out):
        k1, k2 = jax.random.split(k)
        w1, b1 = linear(k1, d_in, d_hidden)
        gamma = jnp.ones((1, d_hidden), jnp.float32)   # BN weight init
        beta = jnp.zeros((1, d_hidden), jnp.float32)   # BN bias init
        w2, b2 = linear(k2, d_hidden, d_out)
        return (w1, b1, gamma, beta, w2, b2)

    k1, k2, k3, k4 = jax.random.split(key, 4)
    return {
        "xy_to_r": mlp_block(k1, x_dim + y_dim, h_dim, r_dim),
        "r_to_z_mu": mlp_block(k2, r_dim, h_dim, z_dim),
        "r_to_z_log_var": mlp_block(k3, r_dim, h_dim, z_dim),
        "xz_to_y": mlp_block(k4, x_dim + z_dim, h_dim, class_num),
    }


if __name__ == "__main__":
    key = jax.random.PRNGKey(0)
    k_param, k_xc, k_yc, k_xt, k_yt, k_eps = jax.random.split(key, 6)

    params = init_params(k_param)

    B, Nc, Nt = 2, 8, 8
    x_context = jax.random.normal(k_xc, (B, Nc, x_dim), jnp.float32)
    y_context = jax.random.randint(k_yc, (B, Nc, y_dim), 0, class_num).astype(jnp.float32)
    x_target = jax.random.normal(k_xt, (B, Nt, x_dim), jnp.float32)
    y_target = jax.random.randint(k_yt, (B, Nt, y_dim), 0, class_num).astype(jnp.float32)

    recon, kl = neural_process_train_forward(
        params, x_context, y_context, x_target, y_target, k_eps)
    jax.block_until_ready((recon, kl))
    assert jnp.isfinite(recon) and jnp.isfinite(kl)
    print("KERNEL_OK")
</pallas_src>

<mosaic_0001>
module attributes {stable_mosaic.version = 11 : i64} {
  func.func @fused_kernel(%arg0: memref<16x37xf32, #tpu.memory_space<vmem>>, %arg1: memref<16x1xf32, #tpu.memory_space<vmem>>, %arg2: memref<16x37xf32, #tpu.memory_space<vmem>>, %arg3: memref<16x1xf32, #tpu.memory_space<vmem>>, %arg4: memref<2x2xf32, #tpu.memory_space<vmem>>, %arg5: memref<208x16xf32, #tpu.memory_space<vmem>>, %arg6: memref<96x8xf32, #tpu.memory_space<vmem>>, %arg7: memref<1x2xf32, #tpu.memory_space<vmem>>) attributes {dimension_semantics = [], scalar_prefetch = 0 : i64, scratch_operands = 0 : i64, tpu.core_type = #tpu.core_type<tc>} {
    %c0 = arith.constant 0 : index
    %c0_0 = arith.constant 0 : index
    %0 = vector.load %arg5[%c0, %c0_0] : memref<208x16xf32, #tpu.memory_space<vmem>>, vector<37x16xf32>
    %c40 = arith.constant 40 : index
    %c0_1 = arith.constant 0 : index
    %1 = vector.load %arg5[%c40, %c0_1] : memref<208x16xf32, #tpu.memory_space<vmem>>, vector<1x16xf32>
    %c48 = arith.constant 48 : index
    %c0_2 = arith.constant 0 : index
    %2 = vector.load %arg5[%c48, %c0_2] : memref<208x16xf32, #tpu.memory_space<vmem>>, vector<8x16xf32>
    %c56 = arith.constant 56 : index
    %c0_3 = arith.constant 0 : index
    %3 = vector.load %arg5[%c56, %c0_3] : memref<208x16xf32, #tpu.memory_space<vmem>>, vector<8x16xf32>
    %c64 = arith.constant 64 : index
    %c0_4 = arith.constant 0 : index
    %4 = vector.load %arg5[%c64, %c0_4] : memref<208x16xf32, #tpu.memory_space<vmem>>, vector<37x16xf32>
    %c104 = arith.constant 104 : index
    %c0_5 = arith.constant 0 : index
    %5 = vector.load %arg5[%c104, %c0_5] : memref<208x16xf32, #tpu.memory_space<vmem>>, vector<2x16xf32>
    %c112 = arith.constant 112 : index
    %c0_6 = arith.constant 0 : index
    %6 = vector.load %arg5[%c112, %c0_6] : memref<208x16xf32, #tpu.memory_space<vmem>>, vector<1x16xf32>
    %c120 = arith.constant 120 : index
    %c0_7 = arith.constant 0 : index
    %7 = vector.load %arg5[%c120, %c0_7] : memref<208x16xf32, #tpu.memory_space<vmem>>, vector<1x16xf32>
    %c128 = arith.constant 128 : index
    %c0_8 = arith.constant 0 : index
    %8 = vector.load %arg5[%c128, %c0_8] : memref<208x16xf32, #tpu.memory_space<vmem>>, vector<1x16xf32>
    %c136 = arith.constant 136 : index
    %c0_9 = arith.constant 0 : index
    %9 = vector.load %arg5[%c136, %c0_9] : memref<208x16xf32, #tpu.memory_space<vmem>>, vector<1x16xf32>
    %c144 = arith.constant 144 : index
    %c0_10 = arith.constant 0 : index
    %10 = vector.load %arg5[%c144, %c0_10] : memref<208x16xf32, #tpu.memory_space<vmem>>, vector<1x16xf32>
    %c152 = arith.constant 152 : index
    %c0_11 = arith.constant 0 : index
    %11 = vector.load %arg5[%c152, %c0_11] : memref<208x16xf32, #tpu.memory_space<vmem>>, vector<1x16xf32>
    %c160 = arith.constant 160 : index
    %c0_12 = arith.constant 0 : index
    %12 = vector.load %arg5[%c160, %c0_12] : memref<208x16xf32, #tpu.memory_space<vmem>>, vector<1x16xf32>
    %c168 = arith.constant 168 : index
    %c0_13 = arith.constant 0 : index
    %13 = vector.load %arg5[%c168, %c0_13] : memref<208x16xf32, #tpu.memory_space<vmem>>, vector<1x16xf32>
    %c176 = arith.constant 176 : index
    %c0_14 = arith.constant 0 : index
    %14 = vector.load %arg5[%c176, %c0_14] : memref<208x16xf32, #tpu.memory_space<vmem>>, vector<1x16xf32>
    %c184 = arith.constant 184 : index
    %c0_15 = arith.constant 0 : index
    %15 = vector.load %arg5[%c184, %c0_15] : memref<208x16xf32, #tpu.memory_space<vmem>>, vector<1x16xf32>
    %c192 = arith.constant 192 : index
    %c0_16 = arith.constant 0 : index
    %16 = vector.load %arg5[%c192, %c0_16] : memref<208x16xf32, #tpu.memory_space<vmem>>, vector<1x16xf32>
    %c200 = arith.constant 200 : index
    %c0_17 = arith.constant 0 : index
    %17 = vector.load %arg5[%c200, %c0_17] : memref<208x16xf32, #tpu.memory_space<vmem>>, vector<1x16xf32>
    %c0_18 = arith.constant 0 : index
    %c0_19 = arith.constant 0 : index
    %18 = vector.load %arg6[%c0_18, %c0_19] : memref<96x8xf32, #tpu.memory_space<vmem>>, vector<16x8xf32>
    %c16 = arith.constant 16 : index
    %c0_20 = arith.constant 0 : index
    %19 = vector.load %arg6[%c16, %c0_20] : memref<96x8xf32, #tpu.memory_space<vmem>>, vector<1x8xf32>
    %c24 = arith.constant 24 : index
    %c0_21 = arith.constant 0 : index
    %20 = vector.load %arg6[%c24, %c0_21] : memref<96x8xf32, #tpu.memory_space<vmem>>, vector<16x2xf32>
    %c40_22 = arith.constant 40 : index
    %c0_23 = arith.constant 0 : index
    %21 = vector.load %arg6[%c40_22, %c0_23] : memref<96x8xf32, #tpu.memory_space<vmem>>, vector<1x2xf32>
    %c48_24 = arith.constant 48 : index
    %c0_25 = arith.constant 0 : index
    %22 = vector.load %arg6[%c48_24, %c0_25] : memref<96x8xf32, #tpu.memory_space<vmem>>, vector<16x2xf32>
    %c64_26 = arith.constant 64 : index
    %c0_27 = arith.constant 0 : index
    %23 = vector.load %arg6[%c64_26, %c0_27] : memref<96x8xf32, #tpu.memory_space<vmem>>, vector<1x2xf32>
    %c72 = arith.constant 72 : index
    %c0_28 = arith.constant 0 : index
    %24 = vector.load %arg6[%c72, %c0_28] : memref<96x8xf32, #tpu.memory_space<vmem>>, vector<16x2xf32>
    %c88 = arith.constant 88 : index
    %c0_29 = arith.constant 0 : index
    %25 = vector.load %arg6[%c88, %c0_29] : memref<96x8xf32, #tpu.memory_space<vmem>>, vector<1x2xf32>
    %c0_30 = arith.constant 0 : index
    %c0_31 = arith.constant 0 : index
    %26 = vector.load %arg0[%c0_30, %c0_31] : memref<16x37xf32, #tpu.memory_space<vmem>>, vector<16x37xf32>
    %c0_32 = arith.constant 0 : index
    %c0_33 = arith.constant 0 : index
    %27 = vector.load %arg1[%c0_32, %c0_33] : memref<16x1xf32, #tpu.memory_space<vmem>>, vector<16x1xf32>
    %c0_34 = arith.constant 0 : index
    %c0_35 = arith.constant 0 : index
    %28 = vector.load %arg2[%c0_34, %c0_35] : memref<16x37xf32, #tpu.memory_space<vmem>>, vector<16x37xf32>
    %c0_36 = arith.constant 0 : index
    %c0_37 = arith.constant 0 : index
    %29 = vector.load %arg3[%c0_36, %c0_37] : memref<16x1xf32, #tpu.memory_space<vmem>>, vector<16x1xf32>
    %cst = arith.constant dense<0.000000e+00> : vector<16x16xf32>
    %30 = tpu.matmul %26, %0, %cst {dimension_numbers = #tpu.dot_dimension_numbers<[1], [0], [0], [1], [0, 0, 1, 1], [], []>} : vector<16x37xf32>, vector<37x16xf32>, vector<16x16xf32> -> vector<16x16xf32>
    %31 = vector.broadcast %27 : vector<16x1xf32> to vector<16x16xf32>
    %32 = vector.broadcast %1 : vector<1x16xf32> to vector<16x16xf32>
    %33 = arith.mulf %31, %32 : vector<16x16xf32>
    %34 = arith.addf %30, %33 : vector<16x16xf32>
    %35 = vector.broadcast %6 : vector<1x16xf32> to vector<16x16xf32>
    %36 = arith.addf %34, %35 : vector<16x16xf32>
    %cst_38 = arith.constant dense<0.000000e+00> : vector<16xf32>
    %37 = vector.multi_reduction <add>, %36, %cst_38 [0] : vector<16x16xf32> to vector<16xf32>
    %38 = vector.shape_cast %37 : vector<16xf32> to vector<1x16xf32>
    %cst_39 = arith.constant 1.600000e+01 : f32
    %39 = vector.broadcast %cst_39 : f32 to vector<1x16xf32>
    %40 = arith.divf %38, %39 : vector<1x16xf32>
    %41 = arith.mulf %36, %36 : vector<16x16xf32>
    %cst_40 = arith.constant dense<0.000000e+00> : vector<16xf32>
    %42 = vector.multi_reduction <add>, %41, %cst_40 [0] : vector<16x16xf32> to vector<16xf32>
    %43 = vector.shape_cast %42 : vector<16xf32> to vector<1x16xf32>
    %cst_41 = arith.constant 1.600000e+01 : f32
    %44 = vector.broadcast %cst_41 : f32 to vector<1x16xf32>
    %45 = arith.divf %43, %44 : vector<1x16xf32>
    %46 = arith.mulf %40, %40 : vector<1x16xf32>
    %47 = arith.subf %45, %46 : vector<1x16xf32>
    %48 = vector.broadcast %40 : vector<1x16xf32> to vector<16x16xf32>
    %49 = arith.subf %36, %48 : vector<16x16xf32>
    %cst_42 = arith.constant 9.99999974E-6 : f32
    %50 = vector.broadcast %cst_42 : f32 to vector<1x16xf32>
    %51 = arith.addf %47, %50 : vector<1x16xf32>
    %52 = math.rsqrt %51 : vector<1x16xf32>
    %53 = vector.broadcast %52 : vector<1x16xf32> to vector<16x16xf32>
    %54 = arith.mulf %49, %53 : vector<16x16xf32>
    %55 = vector.broadcast %7 : vector<1x16xf32> to vector<16x16xf32>
    %56 = arith.mulf %54, %55 : vector<16x16xf32>
    %57 = vector.broadcast %8 : vector<1x16xf32> to vector<16x16xf32>
    %58 = arith.addf %56, %57 : vector<16x16xf32>
    %cst_43 = arith.constant 0.000000e+00 : f32
    %59 = vector.broadcast %cst_43 : f32 to vector<16x16xf32>
    %60 = arith.maximumf %58, %59 : vector<16x16xf32>
    %cst_44 = arith.constant dense<0.000000e+00> : vector<16x8xf32>
    %61 = tpu.matmul %60, %18, %cst_44 {dimension_numbers = #tpu.dot_dimension_numbers<[1], [0], [0], [1], [0, 0, 1, 1], [], []>} : vector<16x16xf32>, vector<16x8xf32>, vector<16x8xf32> -> vector<16x8xf32>
    %62 = vector.broadcast %19 : vector<1x8xf32> to vector<16x8xf32>
    %63 = arith.addf %61, %62 : vector<16x8xf32>
    %64 = tpu.iota {dimensions = array<i32: 0>} : vector<2x16xi32>
    %65 = tpu.iota {dimensions = array<i32: 1>} : vector<2x16xi32>
    %c8_i32 = arith.constant 8 : i32
    %66 = vector.broadcast %c8_i32 : i32 to vector<2x16xi32>
    %67 = arith.muli %64, %66 : vector<2x16xi32>
    %68 = arith.cmpi sge, %65, %67 : vector<2x16xi32>
    %c8_i32_45 = arith.constant 8 : i32
    %69 = vector.broadcast %c8_i32_45 : i32 to vector<2x16xi32>
    %70 = arith.addi %67, %69 : vector<2x16xi32>
    %71 = arith.cmpi slt, %65, %70 : vector<2x16xi32>
    %72 = arith.andi %68, %71 : vector<2x16xi1>
    %cst_46 = arith.constant 1.250000e-01 : f32
    %cst_47 = arith.constant 0.000000e+00 : f32
    %73 = vector.broadcast %cst_46 : f32 to vector<2x16xf32>
    %74 = vector.broadcast %cst_47 : f32 to vector<2x16xf32>
    %75 = arith.select %72, %73, %74 : vector<2x16xi1>, vector<2x16xf32>
    %cst_48 = arith.constant dense<0.000000e+00> : vector<2x8xf32>
    %76 = tpu.matmul %75, %63, %cst_48 {dimension_numbers = #tpu.dot_dimension_numbers<[1], [0], [0], [1], [0, 0, 1, 1], [], []>} : vector<2x16xf32>, vector<16x8xf32>, vector<2x8xf32> -> vector<2x8xf32>
    %cst_49 = arith.constant dense<0.000000e+00> : vector<2x16xf32>
    %77 = tpu.matmul %76, %2, %cst_49 {dimension_numbers = #tpu.dot_dimension_numbers<[1], [0], [0], [1], [0, 0, 1, 1], [], []>} : vector<2x8xf32>, vector<8x16xf32>, vector<2x16xf32> -> vector<2x16xf32>
    %78 = vector.broadcast %9 : vector<1x16xf32> to vector<2x16xf32>
    %79 = arith.addf %77, %78 : vector<2x16xf32>
    %cst_50 = arith.constant dense<0.000000e+00> : vector<16xf32>
    %80 = vector.multi_reduction <add>, %79, %cst_50 [0] : vector<2x16xf32> to vector<16xf32>
    %81 = vector.shape_cast %80 : vector<16xf32> to vector<1x16xf32>
    %cst_51 = arith.constant 2.000000e+00 : f32
    %82 = vector.broadcast %cst_51 : f32 to vector<1x16xf32>
    %83 = arith.divf %81, %82 : vector<1x16xf32>
    %84 = arith.mulf %79, %79 : vector<2x16xf32>
    %cst_52 = arith.constant dense<0.000000e+00> : vector<16xf32>
    %85 = vector.multi_reduction <add>, %84, %cst_52 [0] : vector<2x16xf32> to vector<16xf32>
    %86 = vector.shape_cast %85 : vector<16xf32> to vector<1x16xf32>
    %cst_53 = arith.constant 2.000000e+00 : f32
    %87 = vector.broadcast %cst_53 : f32 to vector<1x16xf32>
    %88 = arith.divf %86, %87 : vector<1x16xf32>
    %89 = arith.mulf %83, %83 : vector<1x16xf32>
    %90 = arith.subf %88, %89 : vector<1x16xf32>
    %91 = vector.broadcast %83 : vector<1x16xf32> to vector<2x16xf32>
    %92 = arith.subf %79, %91 : vector<2x16xf32>
    %cst_54 = arith.constant 9.99999974E-6 : f32
    %93 = vector.broadcast %cst_54 : f32 to vector<1x16xf32>
    %94 = arith.addf %90, %93 : vector<1x16xf32>
    %95 = math.rsqrt %94 : vector<1x16xf32>
    %96 = vector.broadcast %95 : vector<1x16xf32> to vector<2x16xf32>
    %97 = arith.mulf %92, %96 : vector<2x16xf32>
    %98 = vector.broadcast %10 : vector<1x16xf32> to vector<2x16xf32>
    %99 = arith.mulf %97, %98 : vector<2x16xf32>
    %100 = vector.broadcast %11 : vector<1x16xf32> to vector<2x16xf32>
    %101 = arith.addf %99, %100 : vector<2x16xf32>
    %cst_55 = arith.constant 0.000000e+00 : f32
    %102 = vector.broadcast %cst_55 : f32 to vector<2x16xf32>
    %103 = arith.maximumf %101, %102 : vector<2x16xf32>
    %cst_56 = arith.constant dense<0.000000e+00> : vector<2x2xf32>
    %104 = tpu.matmul %103, %20, %cst_56 {dimension_numbers = #tpu.dot_dimension_numbers<[1], [0], [0], [1], [0, 0, 1, 1], [], []>} : vector<2x16xf32>, vector<16x2xf32>, vector<2x2xf32> -> vector<2x2xf32>
    %105 = vector.broadcast %21 : vector<1x2xf32> to vector<2x2xf32>
    %106 = arith.addf %104, %105 : vector<2x2xf32>
    %cst_57 = arith.constant dense<0.000000e+00> : vector<2x16xf32>
    %107 = tpu.matmul %76, %3, %cst_57 {dimension_numbers = #tpu.dot_dimension_numbers<[1], [0], [0], [1], [0, 0, 1, 1], [], []>} : vector<2x8xf32>, vector<8x16xf32>, vector<2x16xf32> -> vector<2x16xf32>
    %108 = vector.broadcast %12 : vector<1x16xf32> to vector<2x16xf32>
    %109 = arith.addf %107, %108 : vector<2x16xf32>
    %cst_58 = arith.constant dense<0.000000e+00> : vector<16xf32>
    %110 = vector.multi_reduction <add>, %109, %cst_58 [0] : vector<2x16xf32> to vector<16xf32>
    %111 = vector.shape_cast %110 : vector<16xf32> to vector<1x16xf32>
    %cst_59 = arith.constant 2.000000e+00 : f32
    %112 = vector.broadcast %cst_59 : f32 to vector<1x16xf32>
    %113 = arith.divf %111, %112 : vector<1x16xf32>
    %114 = arith.mulf %109, %109 : vector<2x16xf32>
    %cst_60 = arith.constant dense<0.000000e+00> : vector<16xf32>
    %115 = vector.multi_reduction <add>, %114, %cst_60 [0] : vector<2x16xf32> to vector<16xf32>
    %116 = vector.shape_cast %115 : vector<16xf32> to vector<1x16xf32>
    %cst_61 = arith.constant 2.000000e+00 : f32
    %117 = vector.broadcast %cst_61 : f32 to vector<1x16xf32>
    %118 = arith.divf %116, %117 : vector<1x16xf32>
    %119 = arith.mulf %113, %113 : vector<1x16xf32>
    %120 = arith.subf %118, %119 : vector<1x16xf32>
    %121 = vector.broadcast %113 : vector<1x16xf32> to vector<2x16xf32>
    %122 = arith.subf %109, %121 : vector<2x16xf32>
    %cst_62 = arith.constant 9.99999974E-6 : f32
    %123 = vector.broadcast %cst_62 : f32 to vector<1x16xf32>
    %124 = arith.addf %120, %123 : vector<1x16xf32>
    %125 = math.rsqrt %124 : vector<1x16xf32>
    %126 = vector.broadcast %125 : vector<1x16xf32> to vector<2x16xf32>
    %127 = arith.mulf %122, %126 : vector<2x16xf32>
    %128 = vector.broadcast %13 : vector<1x16xf32> to vector<2x16xf32>
    %129 = arith.mulf %127, %128 : vector<2x16xf32>
    %130 = vector.broadcast %14 : vector<1x16xf32> to vector<2x16xf32>
    %131 = arith.addf %129, %130 : vector<2x16xf32>
    %cst_63 = arith.constant 0.000000e+00 : f32
    %132 = vector.broadcast %cst_63 : f32 to vector<2x16xf32>
    %133 = arith.maximumf %131, %132 : vector<2x16xf32>
    %cst_64 = arith.constant dense<0.000000e+00> : vector<2x2xf32>
    %134 = tpu.matmul %133, %22, %cst_64 {dimension_numbers = #tpu.dot_dimension_numbers<[1], [0], [0], [1], [0, 0, 1, 1], [], []>} : vector<2x16xf32>, vector<16x2xf32>, vector<2x2xf32> -> vector<2x2xf32>
    %135 = vector.broadcast %23 : vector<1x2xf32> to vector<2x2xf32>
    %136 = arith.addf %134, %135 : vector<2x2xf32>
    %cst_65 = arith.constant dense<0.000000e+00> : vector<16x16xf32>
    %137 = tpu.matmul %28, %0, %cst_65 {dimension_numbers = #tpu.dot_dimension_numbers<[1], [0], [0], [1], [0, 0, 1, 1], [], []>} : vector<16x37xf32>, vector<37x16xf32>, vector<16x16xf32> -> vector<16x16xf32>
    %138 = vector.broadcast %29 : vector<16x1xf32> to vector<16x16xf32>
    %139 = vector.broadcast %1 : vector<1x16xf32> to vector<16x16xf32>
    %140 = arith.mulf %138, %139 : vector<16x16xf32>
    %141 = arith.addf %137, %140 : vector<16x16xf32>
    %142 = vector.broadcast %6 : vector<1x16xf32> to vector<16x16xf32>
    %143 = arith.addf %141, %142 : vector<16x16xf32>
    %cst_66 = arith.constant dense<0.000000e+00> : vector<16xf32>
    %144 = vector.multi_reduction <add>, %143, %cst_66 [0] : vector<16x16xf32> to vector<16xf32>
    %145 = vector.shape_cast %144 : vector<16xf32> to vector<1x16xf32>
    %cst_67 = arith.constant 1.600000e+01 : f32
    %146 = vector.broadcast %cst_67 : f32 to vector<1x16xf32>
    %147 = arith.divf %145, %146 : vector<1x16xf32>
    %148 = arith.mulf %143, %143 : vector<16x16xf32>
    %cst_68 = arith.constant dense<0.000000e+00> : vector<16xf32>
    %149 = vector.multi_reduction <add>, %148, %cst_68 [0] : vector<16x16xf32> to vector<16xf32>
    %150 = vector.shape_cast %149 : vector<16xf32> to vector<1x16xf32>
    %cst_69 = arith.constant 1.600000e+01 : f32
    %151 = vector.broadcast %cst_69 : f32 to vector<1x16xf32>
    %152 = arith.divf %150, %151 : vector<1x16xf32>
    %153 = arith.mulf %147, %147 : vector<1x16xf32>
    %154 = arith.subf %152, %153 : vector<1x16xf32>
    %155 = vector.broadcast %147 : vector<1x16xf32> to vector<16x16xf32>
    %156 = arith.subf %143, %155 : vector<16x16xf32>
    %cst_70 = arith.constant 9.99999974E-6 : f32
    %157 = vector.broadcast %cst_70 : f32 to vector<1x16xf32>
    %158 = arith.addf %154, %157 : vector<1x16xf32>
    %159 = math.rsqrt %158 : vector<1x16xf32>
    %160 = vector.broadcast %159 : vector<1x16xf32> to vector<16x16xf32>
    %161 = arith.mulf %156, %160 : vector<16x16xf32>
    %162 = vector.broadcast %7 : vector<1x16xf32> to vector<16x16xf32>
    %163 = arith.mulf %161, %162 : vector<16x16xf32>
    %164 = vector.broadcast %8 : vector<1x16xf32> to vector<16x16xf32>
    %165 = arith.addf %163, %164 : vector<16x16xf32>
    %cst_71 = arith.constant 0.000000e+00 : f32
    %166 = vector.broadcast %cst_71 : f32 to vector<16x16xf32>
    %167 = arith.maximumf %165, %166 : vector<16x16xf32>
    %cst_72 = arith.constant dense<0.000000e+00> : vector<16x8xf32>
    %168 = tpu.matmul %167, %18, %cst_72 {dimension_numbers = #tpu.dot_dimension_numbers<[1], [0], [0], [1], [0, 0, 1, 1], [], []>} : vector<16x16xf32>, vector<16x8xf32>, vector<16x8xf32> -> vector<16x8xf32>
    %169 = vector.broadcast %19 : vector<1x8xf32> to vector<16x8xf32>
    %170 = arith.addf %168, %169 : vector<16x8xf32>
    %171 = tpu.iota {dimensions = array<i32: 0>} : vector<2x16xi32>
    %172 = tpu.iota {dimensions = array<i32: 1>} : vector<2x16xi32>
    %c8_i32_73 = arith.constant 8 : i32
    %173 = vector.broadcast %c8_i32_73 : i32 to vector<2x16xi32>
    %174 = arith.muli %171, %173 : vector<2x16xi32>
    %175 = arith.cmpi sge, %172, %174 : vector<2x16xi32>
    %c8_i32_74 = arith.constant 8 : i32
    %176 = vector.broadcast %c8_i32_74 : i32 to vector<2x16xi32>
    %177 = arith.addi %174, %176 : vector<2x16xi32>
    %178 = arith.cmpi slt, %172, %177 : vector<2x16xi32>
    %179 = arith.andi %175, %178 : vector<2x16xi1>
    %cst_75 = arith.constant 1.250000e-01 : f32
    %cst_76 = arith.constant 0.000000e+00 : f32
    %180 = vector.broadcast %cst_75 : f32 to vector<2x16xf32>
    %181 = vector.broadcast %cst_76 : f32 to vector<2x16xf32>
    %182 = arith.select %179, %180, %181 : vector<2x16xi1>, vector<2x16xf32>
    %cst_77 = arith.constant dense<0.000000e+00> : vector<2x8xf32>
    %183 = tpu.matmul %182, %170, %cst_77 {dimension_numbers = #tpu.dot_dimension_numbers<[1], [0], [0], [1], [0, 0, 1, 1], [], []>} : vector<2x16xf32>, vector<16x8xf32>, vector<2x8xf32> -> vector<2x8xf32>
    %cst_78 = arith.constant dense<0.000000e+00> : vector<2x16xf32>
    %184 = tpu.matmul %183, %2, %cst_78 {dimension_numbers = #tpu.dot_dimension_numbers<[1], [0], [0], [1], [0, 0, 1, 1], [], []>} : vector<2x8xf32>, vector<8x16xf32>, vector<2x16xf32> -> vector<2x16xf32>
    %185 = vector.broadcast %9 : vector<1x16xf32> to vector<2x16xf32>
    %186 = arith.addf %184, %185 : vector<2x16xf32>
    %cst_79 = arith.constant dense<0.000000e+00> : vector<16xf32>
    %187 = vector.multi_reduction <add>, %186, %cst_79 [0] : vector<2x16xf32> to vector<16xf32>
    %188 = vector.shape_cast %187 : vector<16xf32> to vector<1x16xf32>
    %cst_80 = arith.constant 2.000000e+00 : f32
    %189 = vector.broadcast %cst_80 : f32 to vector<1x16xf32>
    %190 = arith.divf %188, %189 : vector<1x16xf32>
    %191 = arith.mulf %186, %186 : vector<2x16xf32>
    %cst_81 = arith.constant dense<0.000000e+00> : vector<16xf32>
    %192 = vector.multi_reduction <add>, %191, %cst_81 [0] : vector<2x16xf32> to vector<16xf32>
    %193 = vector.shape_cast %192 : vector<16xf32> to vector<1x16xf32>
    %cst_82 = arith.constant 2.000000e+00 : f32
    %194 = vector.broadcast %cst_82 : f32 to vector<1x16xf32>
    %195 = arith.divf %193, %194 : vector<1x16xf32>
    %196 = arith.mulf %190, %190 : vector<1x16xf32>
    %197 = arith.subf %195, %196 : vector<1x16xf32>
    %198 = vector.broadcast %190 : vector<1x16xf32> to vector<2x16xf32>
    %199 = arith.subf %186, %198 : vector<2x16xf32>
    %cst_83 = arith.constant 9.99999974E-6 : f32
    %200 = vector.broadcast %cst_83 : f32 to vector<1x16xf32>
    %201 = arith.addf %197, %200 : vector<1x16xf32>
    %202 = math.rsqrt %201 : vector<1x16xf32>
    %203 = vector.broadcast %202 : vector<1x16xf32> to vector<2x16xf32>
    %204 = arith.mulf %199, %203 : vector<2x16xf32>
    %205 = vector.broadcast %10 : vector<1x16xf32> to vector<2x16xf32>
    %206 = arith.mulf %204, %205 : vector<2x16xf32>
    %207 = vector.broadcast %11 : vector<1x16xf32> to vector<2x16xf32>
    %208 = arith.addf %206, %207 : vector<2x16xf32>
    %cst_84 = arith.constant 0.000000e+00 : f32
    %209 = vector.broadcast %cst_84 : f32 to vector<2x16xf32>
    %210 = arith.maximumf %208, %209 : vector<2x16xf32>
    %cst_85 = arith.constant dense<0.000000e+00> : vector<2x2xf32>
    %211 = tpu.matmul %210, %20, %cst_85 {dimension_numbers = #tpu.dot_dimension_numbers<[1], [0], [0], [1], [0, 0, 1, 1], [], []>} : vector<2x16xf32>, vector<16x2xf32>, vector<2x2xf32> -> vector<2x2xf32>
    %212 = vector.broadcast %21 : vector<1x2xf32> to vector<2x2xf32>
    %213 = arith.addf %211, %212 : vector<2x2xf32>
    %cst_86 = arith.constant dense<0.000000e+00> : vector<2x16xf32>
    %214 = tpu.matmul %183, %3, %cst_86 {dimension_numbers = #tpu.dot_dimension_numbers<[1], [0], [0], [1], [0, 0, 1, 1], [], []>} : vector<2x8xf32>, vector<8x16xf32>, vector<2x16xf32> -> vector<2x16xf32>
    %215 = vector.broadcast %12 : vector<1x16xf32> to vector<2x16xf32>
    %216 = arith.addf %214, %215 : vector<2x16xf32>
    %cst_87 = arith.constant dense<0.000000e+00> : vector<16xf32>
    %217 = vector.multi_reduction <add>, %216, %cst_87 [0] : vector<2x16xf32> to vector<16xf32>
    %218 = vector.shape_cast %217 : vector<16xf32> to vector<1x16xf32>
    %cst_88 = arith.constant 2.000000e+00 : f32
    %219 = vector.broadcast %cst_88 : f32 to vector<1x16xf32>
    %220 = arith.divf %218, %219 : vector<1x16xf32>
    %221 = arith.mulf %216, %216 : vector<2x16xf32>
    %cst_89 = arith.constant dense<0.000000e+00> : vector<16xf32>
    %222 = vector.multi_reduction <add>, %221, %cst_89 [0] : vector<2x16xf32> to vector<16xf32>
    %223 = vector.shape_cast %222 : vector<16xf32> to vector<1x16xf32>
    %cst_90 = arith.constant 2.000000e+00 : f32
    %224 = vector.broadcast %cst_90 : f32 to vector<1x16xf32>
    %225 = arith.divf %223, %224 : vector<1x16xf32>
    %226 = arith.mulf %220, %220 : vector<1x16xf32>
    %227 = arith.subf %225, %226 : vector<1x16xf32>
    %228 = vector.broadcast %220 : vector<1x16xf32> to vector<2x16xf32>
    %229 = arith.subf %216, %228 : vector<2x16xf32>
    %cst_91 = arith.constant 9.99999974E-6 : f32
    %230 = vector.broadcast %cst_91 : f32 to vector<1x16xf32>
    %231 = arith.addf %227, %230 : vector<1x16xf32>
    %232 = math.rsqrt %231 : vector<1x16xf32>
    %233 = vector.broadcast %232 : vector<1x16xf32> to vector<2x16xf32>
    %234 = arith.mulf %229, %233 : vector<2x16xf32>
    %235 = vector.broadcast %13 : vector<1x16xf32> to vector<2x16xf32>
    %236 = arith.mulf %234, %235 : vector<2x16xf32>
    %237 = vector.broadcast %14 : vector<1x16xf32> to vector<2x16xf32>
    %238 = arith.addf %236, %237 : vector<2x16xf32>
    %cst_92 = arith.constant 0.000000e+00 : f32
    %239 = vector.broadcast %cst_92 : f32 to vector<2x16xf32>
    %240 = arith.maximumf %238, %239 : vector<2x16xf32>
    %cst_93 = arith.constant dense<0.000000e+00> : vector<2x2xf32>
    %241 = tpu.matmul %240, %22, %cst_93 {dimension_numbers = #tpu.dot_dimension_numbers<[1], [0], [0], [1], [0, 0, 1, 1], [], []>} : vector<2x16xf32>, vector<16x2xf32>, vector<2x2xf32> -> vector<2x2xf32>
    %242 = vector.broadcast %23 : vector<1x2xf32> to vector<2x2xf32>
    %243 = arith.addf %241, %242 : vector<2x2xf32>
    %244 = arith.subf %213, %106 : vector<2x2xf32>
    %245 = arith.subf %136, %243 : vector<2x2xf32>
    %246 = math.exp %243 : vector<2x2xf32>
    %247 = arith.mulf %244, %244 : vector<2x2xf32>
    %248 = arith.addf %246, %247 : vector<2x2xf32>
    %cst_94 = arith.constant 0.000000e+00 : f32
    %249 = vector.broadcast %cst_94 : f32 to vector<2x2xf32>
    %250 = arith.subf %249, %136 : vector<2x2xf32>
    %251 = math.exp %250 : vector<2x2xf32>
    %252 = arith.mulf %248, %251 : vector<2x2xf32>
    %253 = arith.addf %245, %252 : vector<2x2xf32>
    %cst_95 = arith.constant 1.000000e+00 : f32
    %254 = vector.broadcast %cst_95 : f32 to vector<2x2xf32>
    %255 = arith.subf %253, %254 : vector<2x2xf32>
    %cst_96 = arith.constant 5.000000e-01 : f32
    %256 = vector.broadcast %cst_96 : f32 to vector<2x2xf32>
    %257 = arith.mulf %256, %255 : vector<2x2xf32>
    %cst_97 = arith.constant dense<0.000000e+00> : vector<2xf32>
    %258 = vector.multi_reduction <add>, %257, %cst_97 [0] : vector<2x2xf32> to vector<2xf32>
    %259 = vector.shape_cast %258 : vector<2xf32> to vector<1x2xf32>
    %cst_98 = arith.constant dense<0.000000e+00> : vector<1xf32>
    %260 = vector.multi_reduction <add>, %259, %cst_98 [1] : vector<1x2xf32> to vector<1xf32>
    %261 = vector.shape_cast %260 : vector<1xf32> to vector<1x1xf32>
    %cst_99 = arith.constant 5.000000e-01 : f32
    %262 = vector.broadcast %cst_99 : f32 to vector<2x2xf32>
    %263 = arith.mulf %262, %243 : vector<2x2xf32>
    %264 = math.exp %263 : vector<2x2xf32>
    %c0_100 = arith.constant 0 : index
    %c0_101 = arith.constant 0 : index
    %265 = vector.load %arg4[%c0_100, %c0_101] : memref<2x2xf32, #tpu.memory_space<vmem>>, vector<2x2xf32>
    %266 = arith.mulf %264, %265 : vector<2x2xf32>
    %267 = arith.addf %213, %266 : vector<2x2xf32>
    %268 = tpu.iota {dimensions = array<i32: 0>} : vector<16x2xi32>
    %269 = tpu.iota {dimensions = array<i32: 1>} : vector<16x2xi32>
    %c8_i32_102 = arith.constant 8 : i32
    %270 = vector.broadcast %c8_i32_102 : i32 to vector<16x2xi32>
    %271 = arith.muli %269, %270 : vector<16x2xi32>
    %272 = arith.cmpi sge, %268, %271 : vector<16x2xi32>
    %c8_i32_103 = arith.constant 8 : i32
    %273 = vector.broadcast %c8_i32_103 : i32 to vector<16x2xi32>
    %274 = arith.addi %271, %273 : vector<16x2xi32>
    %275 = arith.cmpi slt, %268, %274 : vector<16x2xi32>
    %276 = arith.andi %272, %275 : vector<16x2xi1>
    %cst_104 = arith.constant 1.000000e+00 : f32
    %cst_105 = arith.constant 0.000000e+00 : f32
    %277 = vector.broadcast %cst_104 : f32 to vector<16x2xf32>
    %278 = vector.broadcast %cst_105 : f32 to vector<16x2xf32>
    %279 = arith.select %276, %277, %278 : vector<16x2xi1>, vector<16x2xf32>
    %cst_106 = arith.constant dense<0.000000e+00> : vector<16x2xf32>
    %280 = tpu.matmul %279, %267, %cst_106 {dimension_numbers = #tpu.dot_dimension_numbers<[1], [0], [0], [1], [0, 0, 1, 1], [], []>} : vector<16x2xf32>, vector<2x2xf32>, vector<16x2xf32> -> vector<16x2xf32>
    %cst_107 = arith.constant dense<0.000000e+00> : vector<16x16xf32>
    %281 = tpu.matmul %28, %4, %cst_107 {dimension_numbers = #tpu.dot_dimension_numbers<[1], [0], [0], [1], [0, 0, 1, 1], [], []>} : vector<16x37xf32>, vector<37x16xf32>, vector<16x16xf32> -> vector<16x16xf32>
    %cst_108 = arith.constant dense<0.000000e+00> : vector<16x16xf32>
    %282 = tpu.matmul %280, %5, %cst_108 {dimension_numbers = #tpu.dot_dimension_numbers<[1], [0], [0], [1], [0, 0, 1, 1], [], []>} : vector<16x2xf32>, vector<2x16xf32>, vector<16x16xf32> -> vector<16x16xf32>
    %283 = arith.addf %281, %282 : vector<16x16xf32>
    %284 = vector.broadcast %15 : vector<1x16xf32> to vector<16x16xf32>
    %285 = arith.addf %283, %284 : vector<16x16xf32>
    %cst_109 = arith.constant dense<0.000000e+00> : vector<16xf32>
    %286 = vector.multi_reduction <add>, %285, %cst_109 [0] : vector<16x16xf32> to vector<16xf32>
    %287 = vector.shape_cast %286 : vector<16xf32> to vector<1x16xf32>
    %cst_110 = arith.constant 1.600000e+01 : f32
    %288 = vector.broadcast %cst_110 : f32 to vector<1x16xf32>
    %289 = arith.divf %287, %288 : vector<1x16xf32>
    %290 = arith.mulf %285, %285 : vector<16x16xf32>
    %cst_111 = arith.constant dense<0.000000e+00> : vector<16xf32>
    %291 = vector.multi_reduction <add>, %290, %cst_111 [0] : vector<16x16xf32> to vector<16xf32>
    %292 = vector.shape_cast %291 : vector<16xf32> to vector<1x16xf32>
    %cst_112 = arith.constant 1.600000e+01 : f32
    %293 = vector.broadcast %cst_112 : f32 to vector<1x16xf32>
    %294 = arith.divf %292, %293 : vector<1x16xf32>
    %295 = arith.mulf %289, %289 : vector<1x16xf32>
    %296 = arith.subf %294, %295 : vector<1x16xf32>
    %297 = vector.broadcast %289 : vector<1x16xf32> to vector<16x16xf32>
    %298 = arith.subf %285, %297 : vector<16x16xf32>
    %cst_113 = arith.constant 9.99999974E-6 : f32
    %299 = vector.broadcast %cst_113 : f32 to vector<1x16xf32>
    %300 = arith.addf %296, %299 : vector<1x16xf32>
    %301 = math.rsqrt %300 : vector<1x16xf32>
    %302 = vector.broadcast %301 : vector<1x16xf32> to vector<16x16xf32>
    %303 = arith.mulf %298, %302 : vector<16x16xf32>
    %304 = vector.broadcast %16 : vector<1x16xf32> to vector<16x16xf32>
    %305 = arith.mulf %303, %304 : vector<16x16xf32>
    %306 = vector.broadcast %17 : vector<1x16xf32> to vector<16x16xf32>
    %307 = arith.addf %305, %306 : vector<16x16xf32>
    %cst_114 = arith.constant 0.000000e+00 : f32
    %308 = vector.broadcast %cst_114 : f32 to vector<16x16xf32>
    %309 = arith.maximumf %307, %308 : vector<16x16xf32>
    %cst_115 = arith.constant dense<0.000000e+00> : vector<16x2xf32>
    %310 = tpu.matmul %309, %24, %cst_115 {dimension_numbers = #tpu.dot_dimension_numbers<[1], [0], [0], [1], [0, 0, 1, 1], [], []>} : vector<16x16xf32>, vector<16x2xf32>, vector<16x2xf32> -> vector<16x2xf32>
    %311 = vector.broadcast %25 : vector<1x2xf32> to vector<16x2xf32>
    %312 = arith.addf %310, %311 : vector<16x2xf32>
    %cst_116 = arith.constant dense<0xFF800000> : vector<16xf32>
    %313 = vector.multi_reduction <maximumf>, %312, %cst_116 [1] : vector<16x2xf32> to vector<16xf32>
    %314 = vector.shape_cast %313 : vector<16xf32> to vector<16x1xf32>
    %315 = vector.broadcast %314 : vector<16x1xf32> to vector<16x2xf32>
    %316 = arith.subf %312, %315 : vector<16x2xf32>
    %317 = math.exp %316 : vector<16x2xf32>
    %cst_117 = arith.constant dense<0.000000e+00> : vector<16xf32>
    %318 = vector.multi_reduction <add>, %317, %cst_117 [1] : vector<16x2xf32> to vector<16xf32>
    %319 = vector.shape_cast %318 : vector<16xf32> to vector<16x1xf32>
    %320 = math.log %319 : vector<16x1xf32>
    %321 = arith.addf %314, %320 : vector<16x1xf32>
    %322 = vector.broadcast %321 : vector<16x1xf32> to vector<16x2xf32>
    %323 = arith.subf %312, %322 : vector<16x2xf32>
    %324 = tpu.iota {dimensions = array<i32: 1>} : vector<16x2xi32>
    %325 = arith.sitofp %324 : vector<16x2xi32> to vector<16x2xf32>
    %326 = vector.broadcast %29 : vector<16x1xf32> to vector<16x2xf32>
    %327 = arith.subf %325, %326 : vector<16x2xf32>
    %328 = math.absf %327 : vector<16x2xf32>
    %cst_118 = arith.constant 5.000000e-01 : f32
    %329 = vector.broadcast %cst_118 : f32 to vector<16x2xf32>
    %330 = arith.cmpf olt, %328, %329 : vector<16x2xf32>
    %cst_119 = arith.constant 1.000000e+00 : f32
    %cst_120 = arith.constant 0.000000e+00 : f32
    %331 = vector.broadcast %cst_119 : f32 to vector<16x2xf32>
    %332 = vector.broadcast %cst_120 : f32 to vector<16x2xf32>
    %333 = arith.select %330, %331, %332 : vector<16x2xi1>, vector<16x2xf32>
    %334 = arith.mulf %323, %333 : vector<16x2xf32>
    %cst_121 = arith.constant dense<0.000000e+00> : vector<16xf32>
    %335 = vector.multi_reduction <add>, %334, %cst_121 [1] : vector<16x2xf32> to vector<16xf32>
    %336 = vector.shape_cast %335 : vector<16xf32> to vector<16x1xf32>
    %cst_122 = arith.constant dense<0.000000e+00> : vector<1xf32>
    %337 = vector.multi_reduction <add>, %336, %cst_122 [0] : vector<16x1xf32> to vector<1xf32>
    %338 = vector.shape_cast %337 : vector<1xf32> to vector<1x1xf32>
    %cst_123 = arith.constant 0.000000e+00 : f32
    %339 = vector.broadcast %cst_123 : f32 to vector<1x1xf32>
    %340 = arith.subf %339, %338 : vector<1x1xf32>
    %cst_124 = arith.constant 6.250000e-02 : f32
    %341 = vector.broadcast %cst_124 : f32 to vector<1x1xf32>
    %342 = arith.mulf %340, %341 : vector<1x1xf32>
    %343 = tpu.iota {dimensions = array<i32: 1>} : vector<1x2xi32>
    %c0_i32 = arith.constant 0 : i32
    %344 = vector.broadcast %c0_i32 : i32 to vector<1x2xi32>
    %345 = arith.cmpi eq, %343, %344 : vector<1x2xi32>
    %346 = vector.shape_cast %342 : vector<1x1xf32> to vector<1x1xf32>
    %347 = vector.broadcast %346 : vector<1x1xf32> to vector<1x2xf32>
    %348 = vector.shape_cast %261 : vector<1x1xf32> to vector<1x1xf32>
    %349 = vector.broadcast %348 : vector<1x1xf32> to vector<1x2xf32>
    %350 = arith.select %345, %347, %349 : vector<1x2xi1>, vector<1x2xf32>
    %c0_125 = arith.constant 0 : index
    %c0_126 = arith.constant 0 : index
    %351 = vector.load %arg7[%c0_125, %c0_126] : memref<1x2xf32, #tpu.memory_space<vmem>>, vector<1x2xf32>
    tpu.vector_store %arg7[%c0_125, %c0_126], %350 {strides = array<i32>} : memref<1x2xf32, #tpu.memory_space<vmem>>, vector<1x2xf32>,
    return
  }
}

</mosaic_0001>

<bundles_post_ra>
// kernel: neural_process_train_forward.1
= control target key start
LH: loop header
LB: loop body
LE: loop exit
PB: predicated region body
PF: predicated region fallthrough
CT: control target
= control target key end

     0   :  { %vm88_vm0 = vcmask 302080   ;;  %v2213_v3 = vmov 0   ;;  %vm95_vm1 = vcmask 1044480   ;;  %vm180_vm2 = vcmask 130048   ;;  %s2657_s5 = inlined_call_operand.vmem [shape: f32[208,16], index: 5, kind: input, shape index: {}]   ;;  %s2658_s0 = inlined_call_operand.vmem [shape: f32[16,37], index: 0, kind: input, shape index: {}]   ;;  %s2659_s1 = inlined_call_operand.vmem [shape: f32[16,1], index: 1, kind: input, shape index: {}]   ;;  %s2660_s6 = inlined_call_operand.vmem [shape: f32[96,8], index: 6, kind: input, shape index: {}]   ;;  %s2661_s3 = inlined_call_operand.vmem [shape: f32[16,1], index: 3, kind: input, shape index: {}]   ;;  %s2662_s2 = inlined_call_operand.vmem [shape: f32[16,37], index: 2, kind: input, shape index: {}]   ;;  %s2663_s4 = inlined_call_operand.vmem [shape: f32[2,2], index: 4, kind: input, shape index: {}]   ;;  %s2664_s7 = inlined_call_operand.vmem [shape: f32[1,2], index: 7, kind: output, shape index: {}]  }
   0x1   :  { %v26_v0 = vld [vmem:[%s2657_s5] sm:$0xff]  ;;  %v27_v1 = vld [vmem:[%s2657_s5 + $0x8] sm:$0xff]  ;;  %v28_v2 = vld [vmem:[%s2657_s5 + $0x10] sm:$0xff]  ;;  %2183 = vset.pattern.permute.xlu0 %v2213_v3  ;;  %2184 = vset.pattern.permute.xlu1 %v2213_v3  ;;  %vm2215_vm3 = vmmov 0   ;;  %v311_v3 = vlaneseq  ;;  %vm398_vm7 = vcmask 64512   ;;  %vm472_vm8 = vcmask 123904  }
   0x2   :  { %v2266_v4 = vpack.c.bf16 %v27_v1, %v26_v0  ;;  %v29_v5 = vld [vmem:[%s2657_s5 + $0x18] sm:$0xff]  ;;  %v64_v6 = vld [vmem:[%s2658_s0] sm:$0xff]  ;;  %v67_v9 = vld [vmem:[%s2659_s1 + $0x8] sm:$0xff]  ;;  %v2214_v1 = vmov 0.0|0.0   ;;  %vm1414_vm14 = vcmask 15360  }
   0x3   :  { %v2274_v7 = vpack.c.bf16 %v29_v5, %v28_v2  ;;  %2001 = vmatprep.mubr.msk.f32.mxu0 %vm88_vm0, %v64_v6  ;;  %v66_v8 = vld [vmem:[%s2659_s1] sm:$0xff]  ;;  %v65_v11 = vld [vmem:[%s2658_s0 + $0x8] sm:$0xff]  ;;  %v2320_v20 = vld [vmem:[%s2657_s5 + $0x70] ss:$0 sm:$0xff]  ;;  %2135 = vmatprep.subr.bf16.mxu1 %v2214_v1  ;;  %v2216_v2 = vmov 0.0   ;;  %v2350_v5 = vshrl.u32 %v311_v3, 7 }
   0x4   :  { %2124 = vmatprep.subr.bf16.mxu0 %v2266_v4  ;;  %74 = vperm.xlu0 %2183, %v66_v8   ;;  %v2289_v10 = vld [vmem:[%s2657_s5 + $0x20] sm:$0x1f]  ;;  %v53_v13 = vld [vmem:[%s2660_s6 + $0x8] sm:$0xff]  ;;  %v2331_v55 = vld [vmem:[%s2657_s5 + $0x78] ss:$0 sm:$0xff]  ;;  %v2353_v8 = vand.u32 127, %v311_v3 }
   0x5   :  { %2126 = vmatpush3.bf16.msra.mxu0 %v2266_v4  ;;  %v52_v12 = vld [vmem:[%s2660_s6] sm:$0xff]  ;;  %v2313_v16 = vld [vmem:[%s2657_s5 + $0x28] ss:$0 sm:$0xff]  ;;  %2015 = vmatprep.mubr.msk.f32.mxu1 %vm2215_vm3, %v2216_v2  ;;  %v315_v6 = vmul.u32 8, %v2350_v5 }
   0x6   :  { %2128 = vmatprep.subr.bf16.mxu0 %v2274_v7  ;;  %v2306_v14 = vpack.c.bf16 %v53_v13, %v52_v12  ;;  %v2336_v58 = vld [vmem:[%s2657_s5 + $0x80] ss:$0 sm:$0xff] }
   0x7   :  { %vm316_vm4 = vcmp.ge.s32.totalorder %v2353_v8, %v315_v6 }
   0x8   :  { %79 = vperm.xlu0 %2183, %v67_v9   ;;  %v317_v9 = vadd.s32 8, %v315_v6 }
   0x9   :  { %2130 = vmatpush3.bf16.msra.mxu0 %v2274_v7 }
   0xa   :  { %1999 = vmatprep.subr.msk.mxu0 %vm95_vm1, %v2289_v10  ;;  %vm318_vm5 = vcmp.lt.s32.totalorder %v2353_v8, %v317_v9 }
   0xb   :  { %vm319_vm6 = vmand %vm316_vm4, %vm318_vm5  ;;  %vm1869_vm4 = vcmp.eq.s32.totalorder %v2353_v8, 0  ;;  %vm1871_vm5 = vcmask 8192  }
   0xd   :  { %2000 = vmatpush3.msk.msra.mxu0 %vm95_vm1, %v2289_v10 }
   0xe   :  { %2002 = vmatmul.mubr.msk.f32.vlgmr.msra.gmra.mrb[0].mxu0 %vm88_vm0, %v65_v11  ;;  %2132 = vmatprep.subr.bf16.mxu0 %v2306_v14  ;;  %v2358_v11 = vld [vmem:[%s2660_s6 + $0x10] ss:$0 sm:$0xff] }
   0xf   :  { %2134 = vmatpush3.bf16.msra.mxu0 %v2306_v14 }
  0x10   :  { %2138 = vmatprep.subr.bf16.mxu0 %v2214_v1 }
  0x83   :  { %v75_v15 = vpop.permute.xlu0 %74 }
  0x84   :  { %v86_v19 = vmul.f32 %v2313_v16, %v75_v15 }
  0x87   :  { %v80_v17 = vpop.permute.xlu0 %79 }
  0x88   :  { %v87_v18 = vmul.f32 %v2313_v16, %v80_v17 }
  0xe1   :  { %v2003_v21 = vpop.f32.mrb[0].mxu0 }
  0xe2   :  { %v171_v22 = vadd.f32 %v2003_v21, %v87_v18  ;;  %v165_v23 = vpop.f32.mrb[1].mxu0  ;;  %v2375_v21 = vld [vmem:[%s2657_s5 + $0x30] sm:$0xff] }
  0xe3   :  { %v166_v24 = vadd.f32 %v165_v23, %v86_v19  ;;  %v2365_v19 = vsel %vm319_vm6, 0.125, %v2216_v2  ;;  %v71_v23 = vld [vmem:[%s2661_s3 + $0x8] sm:$0xff] }
  0xe4   :  { %v179_v25 = vadd.f32 %v2320_v20, %v171_v22  ;;  %v70_v22 = vld [vmem:[%s2661_s3] sm:$0xff] }
  0xe5   :  { %v178_v26 = vadd.f32 %v2320_v20, %v166_v24  ;;  %772 = vperm.xlu1 %2184, %v70_v22   ;;  %v2388_v24 = vld [vmem:[%s2657_s5 + $0x38] sm:$0xff] }
  0xe6   :  { %v182_v27 = vsel %vm180_vm2, %v179_v25, 0.0  ;;  %v193_v28 = vmul.f32 %v179_v25, %v179_v25 }
  0xe7   :  { %v181_v29 = vsel %vm180_vm2, %v178_v26, 0.0  ;;  %v192_v30 = vmul.f32 %v178_v26, %v178_v26 }
  0xe8   :  { %v195_v31 = vsel %vm180_vm2, %v193_v28, 0.0  ;;  %v183_v32 = vadd.f32 %v182_v27, %v181_v29  ;;  %v2398_v27 = vld [vmem:[%s2662_s2] sm:$0xff]  ;;  %v2411_v28 = vld [vmem:[%s2662_s2 + $0x8] sm:$0xff] }
  0xe9   :  { %v194_v33 = vsel %vm180_vm2, %v192_v30, 0.0  ;;  %777 = vperm.xlu1 %2184, %v71_v23  }
  0xea   :  { %v184_v34 = vrot.slane %v183_v32, 4  ;;  %v196_v35 = vadd.f32 %v195_v31, %v194_v33  ;;  %v2439_v33 = vld [vmem:[%s2657_s5 + $0xa0] ss:$0 sm:$0xff] }
  0xec   :  { %v185_v36 = vadd.f32 %v184_v34, %v183_v32  ;;  %v197_v37 = vrot.slane %v196_v35, 4 }
  0xee   :  { %v186_v38 = vrot.slane %v185_v36, 2  ;;  %v198_v39 = vadd.f32 %v197_v37, %v196_v35 }
  0xf0   :  { %v187_v40 = vadd.f32 %v186_v38, %v185_v36  ;;  %v199_v41 = vrot.slane %v198_v39, 2 }
  0xf2   :  { %v188_v42 = vrot.slane %v187_v40, 1  ;;  %v200_v43 = vadd.f32 %v199_v41, %v198_v39 }
  0xf4   :  { %v189_v44 = vadd.f32 %v188_v42, %v187_v40  ;;  %v201_v45 = vrot.slane %v200_v43, 1 }
  0xf6   :  { %v191_v46 = vmul.f32 0.0625, %v189_v44  ;;  %v202_v47 = vadd.f32 %v201_v45, %v200_v43 }
  0xf8   :  { %v203_v48 = vmul.f32 0.0625, %v202_v47  ;;  %v204_v49 = vmul.f32 %v191_v46, %v191_v46  ;;  %v206_v50 = vsub.f32 %v178_v26, %v191_v46  ;;  %v207_v51 = vsub.f32 %v179_v25, %v191_v46 }
  0xfa   :  { %v205_v52 = vsub.f32 %v203_v48, %v204_v49 }
  0xfc   :  { %v208_v53 = vadd.f32 1e-05, %v205_v52 }
  0xfe   :  { %2185 = vrsqrt.f32 %v208_v53 }
 0x108   :  { %v2186_v54 = vpop.eup %2185 }
 0x109   :  { %v210_v56 = vmul.f32 %v2186_v54, %v206_v50  ;;  %v211_v57 = vmul.f32 %v2186_v54, %v207_v51 }
 0x10b   :  { %v216_v59 = vmul.f32 %v2331_v55, %v210_v56  ;;  %v217_v60 = vmul.f32 %v2331_v55, %v211_v57 }
 0x10d   :  { %v222_v61 = vadd.f32 %v2336_v58, %v216_v59  ;;  %v223_v62 = vadd.f32 %v2336_v58, %v217_v60 }
 0x10f   :  { %v224_v63 = vmax.f32 %v222_v61, 0.0  ;;  %v225_v0 = vmax.f32 %v223_v62, 0.0 }
 0x111   :  { %2008 = vmatprep.mubr.msk.f32.mxu0 %vm180_vm2, %v224_v63 }
 0x112   :  { %2009 = vmatmul.mubr.msk.f32.vlgmr.msra.gmra.mrb[2].mxu0 %vm180_vm2, %v225_v0 }
 0x113   :  { %2027 = vmatprep.mubr.msk.f32.mxu0 %vm2215_vm3, %v2216_v2 }
 0x164   :  { %v2445_v37 = vpop.permute.xlu1 %772 }
 0x165   :  { %v780_v9 = vmul.f32 %v2313_v16, %v2445_v37 }
 0x168   :  { %v2456_v54 = vpop.permute.xlu1 %777 }
 0x169   :  { %v781_v61 = vmul.f32 %v2313_v16, %v2456_v54 }
 0x1e5   :  { %v2010_v12 = vpop.f32.mrb[2].mxu0 }
 0x1e6   :  { %v308_v13 = vadd.f32 %v2010_v12, %v2358_v11  ;;  %v302_v15 = vpop.f32.mrb[3].mxu0 }
 0x1e7   :  { %v303_v17 = vadd.f32 %v2358_v11, %v302_v15 }
 0x1e9   :  { %v2136_v18 = vpack.c.bf16 %v308_v13, %v303_v17 }
 0x1eb   :  { %2137 = vmatpush3.bf16.msra.mxu1 %v2136_v18 }
 0x1ec   :  { %2018 = vmatprep.subr.mxu1 %v2216_v2 }
 0x1ee   :  { %2016 = vmatmul.mubr.msk.f32.vlgmr.msra.gmra.mrb[0].mxu1 %vm180_vm2, %v2365_v19 }
 0x1ef   :  { %2020 = vmatprep.mubr.msk.f32.mxu1 %vm2215_vm3, %v2216_v2  ;;  %2019 = vmatpush3.msra.mxu1 %v2375_v21 }
 0x1f0   :  { %2030 = vmatprep.subr.mxu1 %v2216_v2 }
 0x2c1   :  { %v390_v25 = vpop.f32.mrb[0].mxu1 }
 0x2c2   :  { %v2017_v26 = vpop.f32.mrb[1].mxu1  ;;  %2021 = vmatmul.mubr.msk.f32.vlgmr.msra.gmra.mrb[2].mxu1 %vm398_vm7, %v390_v25 }
 0x2c3   :  { %2031 = vmatpush3.msra.mxu1 %v2388_v24  ;;  %2032 = vmatprep.mubr.msk.f32.mxu1 %vm2215_vm3, %v2216_v2 }
 0x2c4   :  { %2145 = vmatprep.subr.bf16.mxu1 %v2266_v4 }
 0x2c6   :  { %2033 = vmatmul.mubr.msk.f32.vlgmr.msra.gmra.mrb[4].mxu1 %vm398_vm7, %v390_v25 }
 0x2c7   :  { %2147 = vmatpush3.bf16.msra.mxu1 %v2266_v4  ;;  %2052 = vmatprep.mubr.msk.f32.mxu1 %vm88_vm0, %v2398_v27  ;;  %v55_v4 = vld [vmem:[%s2660_s6 + $0x18] sm:$0xff] }
 0x2c8   :  { %2149 = vmatprep.subr.bf16.mxu1 %v2274_v7 }
 0x2cb   :  { %2151 = vmatpush3.bf16.msra.mxu1 %v2274_v7  ;;  %v56_v7 = vld [vmem:[%s2660_s6 + $0x20] sm:$0xff] }
 0x2cc   :  { %2050 = vmatprep.subr.msk.mxu1 %vm95_vm1, %v2289_v10  ;;  %v2139_v29 = vpack.c.bf16 %v56_v7, %v55_v4 }
 0x2ce   :  { %2140 = vmatpush3.bf16.msra.mxu0 %v2139_v29 }
 0x2cf   :  { %2051 = vmatpush3.msk.msra.mxu1 %vm95_vm1, %v2289_v10  ;;  %2141 = vmatprep.subr.bf16.mxu0 %v2214_v1  ;;  %v2431_v10 = vld [vmem:[%s2657_s5 + $0x88] ss:$0 sm:$0xff] }
 0x2d0   :  { %2053 = vmatmul.mubr.msk.f32.vlgmr.msra.gmra.mrb[6].mxu1 %vm88_vm0, %v2411_v28  ;;  %2159 = vmatprep.subr.bf16.mxu1 %v2214_v1 }
 0x2d1   :  { %2078 = vmatprep.mubr.msk.f32.mxu1 %vm2215_vm3, %v2216_v2  ;;  %2161 = vmatpush3.bf16.msra.mxu1 %v2139_v29 }
 0x2d2   :  { %2162 = vmatprep.subr.bf16.mxu1 %v2214_v1 }
 0x395   :  { %v468_v30 = vpop.f32.mrb[2].mxu1 }
 0x396   :  { %v2434_v31 = vadd.f32 %v2431_v10, %v468_v30  ;;  %v2022_v32 = vpop.f32.mrb[3].mxu1 }
 0x398   :  { %v473_v34 = vsel %vm472_vm8, %v2434_v31, 0.0  ;;  %v482_v35 = vmul.f32 %v2434_v31, %v2434_v31 }
 0x399   :  { %v474_v36 = vrot.slane %v473_v34, 4  ;;  %v655_v38 = vpop.f32.mrb[4].mxu1 }
 0x39a   :  { %v483_v39 = vsel %vm472_vm8, %v482_v35, 0.0  ;;  %v2449_v40 = vadd.f32 %v2439_v33, %v655_v38  ;;  %v2034_v41 = vpop.f32.mrb[5].mxu1 }
 0x39b   :  { %v475_v42 = vadd.f32 %v474_v36, %v473_v34  ;;  %v484_v43 = vrot.slane %v483_v39, 4 }
 0x39c   :  { %v659_v44 = vsel %vm472_vm8, %v2449_v40, 0.0  ;;  %v667_v45 = vmul.f32 %v2449_v40, %v2449_v40 }
 0x39d   :  { %v476_v46 = vrot.slane %v475_v42, 2  ;;  %v485_v47 = vadd.f32 %v484_v43, %v483_v39  ;;  %v660_v48 = vrot.slane %v659_v44, 4 }
 0x39e   :  { %v668_v49 = vsel %vm472_vm8, %v667_v45, 0.0 }
 0x39f   :  { %v477_v50 = vadd.f32 %v476_v46, %v475_v42  ;;  %v486_v51 = vrot.slane %v485_v47, 2  ;;  %v661_v52 = vadd.f32 %v660_v48, %v659_v44  ;;  %v669_v53 = vrot.slane %v668_v49, 4 }
 0x3a1   :  { %v478_v56 = vrot.slane %v477_v50, 1  ;;  %v487_v57 = vadd.f32 %v486_v51, %v485_v47  ;;  %v662_v59 = vrot.slane %v661_v52, 2  ;;  %v670_v60 = vadd.f32 %v669_v53, %v668_v49 }
 0x3a3   :  { %v479_v62 = vadd.f32 %v478_v56, %v477_v50  ;;  %v488_v63 = vrot.slane %v487_v57, 1  ;;  %v663_v0 = vadd.f32 %v662_v59, %v661_v52  ;;  %v671_v3 = vrot.slane %v670_v60, 2  ;;  %v2054_v6 = vpop.f32.mrb[6].mxu1 }
 0x3a4   :  { %v860_v12 = vadd.f32 %v2054_v6, %v781_v61  ;;  %v854_v13 = vpop.f32.mrb[7].mxu1 }
 0x3a5   :  { %v481_v15 = vmul.f32 0.5, %v479_v62  ;;  %v489_v17 = vadd.f32 %v488_v63, %v487_v57  ;;  %v664_v18 = vrot.slane %v663_v0, 1  ;;  %v672_v22 = vadd.f32 %v671_v3, %v670_v60  ;;  %v2482_v63 = vld [vmem:[%s2657_s5 + $0x90] ss:$0 sm:$0xff] }
 0x3a6   :  { %v2463_v23 = vadd.f32 %v2320_v20, %v860_v12  ;;  %v855_v25 = vadd.f32 %v854_v13, %v780_v9  ;;  %v2487_v9 = vld [vmem:[%s2657_s5 + $0x98] ss:$0 sm:$0xff] }
 0x3a7   :  { %v490_v26 = vmul.f32 0.5, %v489_v17  ;;  %v491_v4 = vmul.f32 %v481_v15, %v481_v15  ;;  %v665_v7 = vadd.f32 %v664_v18, %v663_v0  ;;  %v673_v29 = vrot.slane %v672_v22, 1  ;;  %v59_v18 = vld [vmem:[%s2660_s6 + $0x38] sm:$0xff] }
 0x3a8   :  { %v866_v30 = vsel %vm180_vm2, %v2463_v23, 0.0  ;;  %v876_v16 = vmul.f32 %v2463_v23, %v2463_v23  ;;  %v2470_v32 = vadd.f32 %v2320_v20, %v855_v25  ;;  %v493_v61 = vsub.f32 %v2434_v31, %v481_v15  ;;  %v58_v15 = vld [vmem:[%s2660_s6 + $0x30] sm:$0xff] }
 0x3a9   :  { %v492_v34 = vsub.f32 %v490_v26, %v491_v4  ;;  %v666_v35 = vmul.f32 0.5, %v665_v7  ;;  %v674_v36 = vadd.f32 %v673_v29, %v672_v22 }
 0x3aa   :  { %v878_v38 = vsel %vm180_vm2, %v876_v16, 0.0  ;;  %v865_v39 = vsel %vm180_vm2, %v2470_v32, 0.0  ;;  %v875_v41 = vmul.f32 %v2470_v32, %v2470_v32 }
 0x3ab   :  { %v494_v42 = vadd.f32 1e-05, %v492_v34  ;;  %v676_v43 = vmul.f32 %v666_v35, %v666_v35  ;;  %v867_v44 = vadd.f32 %v866_v30, %v865_v39  ;;  %v675_v45 = vmul.f32 0.5, %v674_v36  ;;  %v2510_v36 = vld [vmem:[%s2657_s5 + $0xb0] ss:$0 sm:$0xff] }
 0x3ac   :  { %v877_v46 = vsel %vm180_vm2, %v875_v41, 0.0  ;;  %v678_v31 = vsub.f32 %v2449_v40, %v666_v35  ;;  %v2503_v40 = vld [vmem:[%s2657_s5 + $0xa8] ss:$0 sm:$0xff]  ;;  %v2505_v34 = vpack.c.bf16 %v59_v18, %v58_v15 }
 0x3ad   :  { %2187 = vrsqrt.f32 %v494_v42  ;;  %v868_v20 = vrot.slane %v867_v44, 4  ;;  %v879_v47 = vadd.f32 %v878_v38, %v877_v46  ;;  %v677_v48 = vsub.f32 %v675_v45, %v676_v43 }
 0x3af   :  { %v869_v49 = vadd.f32 %v868_v20, %v867_v44  ;;  %v880_v50 = vrot.slane %v879_v47, 4  ;;  %v679_v51 = vadd.f32 1e-05, %v677_v48 }
 0x3b1   :  { %v870_v52 = vrot.slane %v869_v49, 2  ;;  %v881_v53 = vadd.f32 %v880_v50, %v879_v47  ;;  %2189 = vrsqrt.f32 %v679_v51 }
 0x3b3   :  { %v871_v56 = vadd.f32 %v870_v52, %v869_v49  ;;  %v882_v57 = vrot.slane %v881_v53, 2 }
 0x3b5   :  { %v872_v59 = vrot.slane %v871_v56, 1  ;;  %v883_v60 = vadd.f32 %v882_v57, %v881_v53 }
 0x3b7   :  { %v2188_v62 = vpop.eup %2187  ;;  %v873_v0 = vadd.f32 %v872_v59, %v871_v56  ;;  %v884_v3 = vrot.slane %v883_v60, 1 }
 0x3b8   :  { %v496_v6 = vmul.f32 %v2188_v62, %v493_v61 }
 0x3b9   :  { %v874_v12 = vmul.f32 0.0625, %v873_v0  ;;  %v885_v13 = vadd.f32 %v884_v3, %v883_v60 }
 0x3ba   :  { %v501_v17 = vmul.f32 %v2482_v63, %v496_v6 }
 0x3bb   :  { %v886_v22 = vmul.f32 0.0625, %v885_v13  ;;  %v887_v25 = vmul.f32 %v874_v12, %v874_v12  ;;  %v889_v26 = vsub.f32 %v2470_v32, %v874_v12  ;;  %v890_v4 = vsub.f32 %v2463_v23, %v874_v12  ;;  %v2190_v7 = vpop.eup %2189 }
 0x3bc   :  { %v506_v29 = vadd.f32 %v2487_v9, %v501_v17  ;;  %v681_v30 = vmul.f32 %v2190_v7, %v678_v31 }
 0x3bd   :  { %v888_v16 = vsub.f32 %v886_v22, %v887_v25 }
 0x3be   :  { %v507_v35 = vmax.f32 %v506_v29, 0.0  ;;  %v686_v23 = vmul.f32 %v2503_v40, %v681_v30 }
 0x3bf   :  { %v891_v32 = vadd.f32 1e-05, %v888_v16 }
 0x3c0   :  { %2028 = vmatmul.mubr.msk.f32.vlgmr.msra.gmra.mrb[4].mxu0 %vm180_vm2, %v507_v35  ;;  %v691_v38 = vadd.f32 %v2510_v36, %v686_v23 }
 0x3c1   :  { %2191 = vrsqrt.f32 %v891_v32  ;;  %2143 = vmatpush3.bf16.msra.mxu0 %v2505_v34  ;;  %2039 = vmatprep.mubr.msk.f32.mxu0 %vm2215_vm3, %v2216_v2 }
 0x3c2   :  { %2153 = vmatprep.subr.bf16.mxu0 %v2306_v14  ;;  %v692_v39 = vmax.f32 %v691_v38, 0.0 }
 0x3c4   :  { %2040 = vmatmul.mubr.msk.f32.vlgmr.msra.gmra.mrb[6].mxu0 %vm180_vm2, %v692_v39 }
 0x3c5   :  { %2155 = vmatpush3.bf16.msra.mxu0 %v2306_v14 }
 0x3c6   :  { %2156 = vmatprep.subr.bf16.mxu0 %v2214_v1 }
 0x3cb   :  { %v2192_v41 = vpop.eup %2191 }
 0x3cc   :  { %v893_v42 = vmul.f32 %v2192_v41, %v889_v26  ;;  %v894_v43 = vmul.f32 %v2192_v41, %v890_v4 }
 0x3ce   :  { %v895_v44 = vmul.f32 %v2331_v55, %v893_v42  ;;  %v896_v45 = vmul.f32 %v2331_v55, %v894_v43 }
 0x3d0   :  { %v897_v46 = vadd.f32 %v2336_v58, %v895_v44  ;;  %v898_v20 = vadd.f32 %v2336_v58, %v896_v45 }
 0x3d2   :  { %v899_v47 = vmax.f32 %v897_v46, 0.0  ;;  %v900_v48 = vmax.f32 %v898_v20, 0.0 }
 0x3d4   :  { %2059 = vmatprep.mubr.msk.f32.mxu0 %vm180_vm2, %v899_v47 }
 0x3d5   :  { %2060 = vmatmul.mubr.msk.f32.vlgmr.msra.gmra.mrb[8].mxu0 %vm180_vm2, %v900_v48 }
 0x3d6   :  { %2066 = vmatprep.mubr.msk.f32.mxu0 %vm2215_vm3, %v2216_v2 }
 0x493   :  { %v2530_v14 = vpop.f32.mrb[4].mxu0 }
 0x494   :  { %v2029_v1 = vpop.f32.mrb[5].mxu0 }
 0x497   :  { %v2532_v49 = vpop.f32.mrb[6].mxu0 }
 0x498   :  { %v2041_v50 = vpop.f32.mrb[7].mxu0 }
 0x4a8   :  { %v2061_v55 = vpop.f32.mrb[8].mxu0 }
 0x4a9   :  { %v979_v51 = vadd.f32 %v2061_v55, %v2358_v11  ;;  %v973_v52 = vpop.f32.mrb[9].mxu0 }
 0x4aa   :  { %v974_v58 = vadd.f32 %v2358_v11, %v973_v52 }
 0x4ac   :  { %v2157_v53 = vpack.c.bf16 %v979_v51, %v974_v58 }
 0x4ae   :  { %2158 = vmatpush3.bf16.msra.mxu0 %v2157_v53 }
 0x4af   :  { %2069 = vmatprep.subr.mxu0 %v2216_v2 }
 0x4b1   :  { %2067 = vmatmul.mubr.msk.f32.vlgmr.msra.gmra.mrb[10].mxu0 %vm180_vm2, %v2365_v19 }
 0x4b2   :  { %2070 = vmatpush3.msra.mxu0 %v2375_v21  ;;  %2071 = vmatprep.mubr.msk.f32.mxu0 %vm2215_vm3, %v2216_v2 }
 0x4b3   :  { %2081 = vmatprep.subr.mxu0 %v2216_v2 }
 0x584   :  { %v1048_v56 = vpop.f32.mrb[10].mxu0 }
 0x585   :  { %v2068_v57 = vpop.f32.mrb[11].mxu0  ;;  %2072 = vmatmul.mubr.msk.f32.vlgmr.msra.gmra.mrb[12].mxu0 %vm398_vm7, %v1048_v56 }
 0x586   :  { %2082 = vmatpush3.msra.mxu0 %v2388_v24  ;;  %2083 = vmatprep.mubr.msk.f32.mxu0 %vm2215_vm3, %v2216_v2 }
 0x589   :  { %2084 = vmatmul.mubr.msk.f32.vlgmr.msra.gmra.mrb[14].mxu0 %vm398_vm7, %v1048_v56 }
 0x658   :  { %v1121_v11 = vpop.f32.mrb[12].mxu0 }
 0x659   :  { %v1122_v19 = vadd.f32 %v2431_v10, %v1121_v11  ;;  %v2073_v21 = vpop.f32.mrb[13].mxu0 }
 0x65b   :  { %v1125_v59 = vsel %vm472_vm8, %v1122_v19, 0.0  ;;  %v1133_v60 = vmul.f32 %v1122_v19, %v1122_v19 }
 0x65c   :  { %v1126_v61 = vrot.slane %v1125_v59, 4  ;;  %v1290_v62 = vpop.f32.mrb[14].mxu0 }
 0x65d   :  { %v1134_v0 = vsel %vm472_vm8, %v1133_v60, 0.0  ;;  %v1291_v3 = vadd.f32 %v2439_v33, %v1290_v62  ;;  %v2085_v6 = vpop.f32.mrb[15].mxu0 }
 0x65e   :  { %v1127_v24 = vadd.f32 %v1126_v61, %v1125_v59  ;;  %v1135_v12 = vrot.slane %v1134_v0, 4 }
 0x65f   :  { %v1294_v13 = vsel %vm472_vm8, %v1291_v3, 0.0  ;;  %v1302_v17 = vmul.f32 %v1291_v3, %v1291_v3 }
 0x660   :  { %v1128_v31 = vrot.slane %v1127_v24, 2  ;;  %v1136_v15 = vadd.f32 %v1135_v12, %v1134_v0  ;;  %v1295_v18 = vrot.slane %v1294_v13, 4 }
 0x661   :  { %v1303_v10 = vsel %vm472_vm8, %v1302_v17, 0.0 }
 0x662   :  { %v1129_v22 = vadd.f32 %v1128_v31, %v1127_v24  ;;  %v1137_v25 = vrot.slane %v1136_v15, 2  ;;  %v1296_v26 = vadd.f32 %v1295_v18, %v1294_v13  ;;  %v1304_v4 = vrot.slane %v1303_v10, 4 }
 0x664   :  { %v1130_v7 = vrot.slane %v1129_v22, 1  ;;  %v1138_v29 = vadd.f32 %v1137_v25, %v1136_v15  ;;  %v1297_v30 = vrot.slane %v1296_v26, 2  ;;  %v1305_v16 = vadd.f32 %v1304_v4, %v1303_v10 }
 0x666   :  { %v1131_v33 = vadd.f32 %v1130_v7, %v1129_v22  ;;  %v1139_v35 = vrot.slane %v1138_v29, 1  ;;  %v1298_v23 = vadd.f32 %v1297_v30, %v1296_v26  ;;  %v1306_v32 = vrot.slane %v1305_v16, 2 }
 0x668   :  { %v1132_v38 = vmul.f32 0.5, %v1131_v33  ;;  %v1140_v39 = vadd.f32 %v1139_v35, %v1138_v29  ;;  %v1299_v41 = vrot.slane %v1298_v23, 1  ;;  %v1307_v42 = vadd.f32 %v1306_v32, %v1305_v16 }
 0x66a   :  { %v1141_v43 = vmul.f32 0.5, %v1140_v39  ;;  %v1142_v44 = vmul.f32 %v1132_v38, %v1132_v38  ;;  %v1300_v45 = vadd.f32 %v1299_v41, %v1298_v23  ;;  %v1308_v46 = vrot.slane %v1307_v42, 1 }
 0x66b   :  { %v1144_v58 = vsub.f32 %v1122_v19, %v1132_v38 }
 0x66c   :  { %v1143_v20 = vsub.f32 %v1141_v43, %v1142_v44  ;;  %v1301_v47 = vmul.f32 0.5, %v1300_v45  ;;  %v1309_v48 = vadd.f32 %v1308_v46, %v1307_v42  ;;  %v39_v42 = vld [vmem:[%s2657_s5 + $0x68] sm:$0x3]  ;;  %v34_v43 = vld [vmem:[%s2657_s5 + $0x40] sm:$0xff]  ;;  %v36_v46 = vld [vmem:[%s2657_s5 + $0x50] sm:$0xff] }
 0x66d   :  { %v35_v44 = vld [vmem:[%s2657_s5 + $0x48] sm:$0xff] }
 0x66e   :  { %v1145_v1 = vadd.f32 1e-05, %v1143_v20  ;;  %v1311_v50 = vmul.f32 %v1301_v47, %v1301_v47  ;;  %v1310_v55 = vmul.f32 0.5, %v1309_v48  ;;  %v1313_v11 = vsub.f32 %v1291_v3, %v1301_v47  ;;  %v37_v20 = vld [vmem:[%s2657_s5 + $0x58] sm:$0xff] }
 0x66f   :  { %v2165_v45 = vpack.c.bf16 %v35_v44, %v34_v43 }
 0x670   :  { %2193 = vrsqrt.f32 %v1145_v1  ;;  %v1312_v51 = vsub.f32 %v1310_v55, %v1311_v50  ;;  %v2169_v1 = vpack.c.bf16 %v37_v20, %v36_v46  ;;  %v38_v50 = vld [vmem:[%s2657_s5 + $0x60] sm:$0x1f]  ;;  %v61_v55 = vld [vmem:[%s2660_s6 + $0x48] sm:$0xff] }
 0x672   :  { %v1314_v52 = vadd.f32 1e-05, %v1312_v51 }
 0x674   :  { %2195 = vrsqrt.f32 %v1314_v52  ;;  %v1920_v52 = vld [vmem:[%s2657_s5 + $0xb8] ss:$0 sm:$0xff] }
 0x67a   :  { %v2194_v53 = vpop.eup %2193 }
 0x67b   :  { %v1147_v56 = vmul.f32 %v2194_v53, %v1144_v58 }
 0x67d   :  { %v1148_v57 = vmul.f32 %v2482_v63, %v1147_v56  ;;  %v1425_v63 = vmul.u32 8, %v2353_v8 }
 0x67e   :  { %v2196_v21 = vpop.eup %2195 }
 0x67f   :  { %v1149_v59 = vadd.f32 %v2487_v9, %v1148_v57  ;;  %v1316_v60 = vmul.f32 %v2196_v21, %v1313_v11  ;;  %v1428_v3 = vadd.s32 8, %v1425_v63  ;;  %v1424_v9 = vadd.s32 8, %v2350_v5 }
 0x680   :  { %vm1426_vm9 = vcmp.ge.s32.totalorder %v2350_v5, %v1425_v63 }
 0x681   :  { %v1150_v61 = vmax.f32 %v1149_v59, 0.0  ;;  %v1317_v62 = vmul.f32 %v2503_v40, %v1316_v60  ;;  %vm1429_vm10 = vcmp.lt.s32.totalorder %v2350_v5, %v1428_v3  ;;  %vm1427_vm12 = vcmp.ge.s32.totalorder %v1424_v9, %v1425_v63  ;;  %v1892_v5 = vld [vmem:[%s2660_s6 + $0x28] ss:$0 sm:$0xff] }
 0x682   :  { %vm1431_vm11 = vmand %vm1426_vm9, %vm1429_vm10  ;;  %vm1430_vm13 = vcmp.lt.s32.totalorder %v1424_v9, %v1428_v3  ;;  %v582_v12 = vadd.f32 %v1892_v5, %v2530_v14  ;;  %v1421_v14 = vld [vmem:[%s2663_s4] sm:$0x3] }
 0x683   :  { %2079 = vmatmul.mubr.msk.f32.vlgmr.msra.gmra.mrb[8].mxu1 %vm180_vm2, %v1150_v61  ;;  %v1318_v0 = vadd.f32 %v2510_v36, %v1317_v62  ;;  %v1433_v40 = vsel %vm1431_vm11, 1.0, %v2216_v2  ;;  %vm2568_vm15 = vmand %vm1427_vm12, %vm1430_vm13  ;;  %v1898_v36 = vld [vmem:[%s2660_s6 + $0x40] ss:$0 sm:$0xff] }
 0x684   :  { %2164 = vmatpush3.bf16.msra.mxu1 %v2505_v34  ;;  %2090 = vmatprep.mubr.msk.f32.mxu1 %vm2215_vm3, %v2216_v2  ;;  %v767_v6 = vadd.f32 %v1898_v36, %v2532_v49  ;;  %vm1441_vm3 = vcmask 1041408   ;;  %v1434_v41 = vsel %vm2568_vm15, 1.0, %v2216_v2 }
 0x685   :  { %v1319_v19 = vmax.f32 %v1318_v0, 0.0  ;;  %2095 = vmatprep.mubr.msk.f32.mxu0 %vm1414_vm14, %v1433_v40  ;;  %2098 = vmatprep.subr.msk.mxu1 %vm1441_vm3, %v39_v42 }
 0x686   :  { %v1399_v31 = vsub.f32 0.0, %v767_v6 }
 0x687   :  { %2091 = vmatmul.mubr.msk.f32.vlgmr.msra.gmra.mrb[10].mxu1 %vm180_vm2, %v1319_v19 }
 0x688   :  { %v1400_v25 = vmul.f32 1.442695, %v1399_v31  ;;  %2099 = vmatpush3.msk.msra.mxu1 %vm1441_vm3, %v39_v42 }
 0x689   :  { %2166 = vmatprep.subr.bf16.mxu1 %v2165_v45 }
 0x756   :  { %v1220_v24 = vpop.f32.mrb[8].mxu1 }
 0x757   :  { %v1221_v13 = vadd.f32 %v1892_v5, %v1220_v24  ;;  %v2080_v17 = vpop.f32.mrb[9].mxu1 }
 0x759   :  { %v1393_v15 = vsub.f32 %v1221_v13, %v582_v12 }
 0x75a   :  { %v1389_v18 = vpop.f32.mrb[10].mxu1 }
 0x75b   :  { %v1390_v10 = vadd.f32 %v1898_v36, %v1389_v18  ;;  %v2092_v22 = vpop.f32.mrb[11].mxu1  ;;  %v1397_v30 = vmul.f32 %v1393_v15, %v1393_v15 }
 0x75d   :  { %v1394_v26 = vsub.f32 %v767_v6, %v1390_v10  ;;  %v1395_v4 = vmul.f32 1.442695, %v1390_v10  ;;  %v1418_v7 = vmul.f32 0.5, %v1390_v10 }
 0x75f   :  { %2197 = vpow2.f32 %v1395_v4  ;;  %v1419_v29 = vmul.f32 1.442695, %v1418_v7  ;;  %v1921_v4 = vld [vmem:[%s2657_s5 + $0xc0] ss:$0 sm:$0xff] }
 0x760   :  { %2199 = vpow2.f32 %v1400_v25 }
 0x761   :  { %2201 = vpow2.f32 %v1419_v29 }
 0x769   :  { %v2198_v49 = vpop.eup %2197 }
 0x76a   :  { %v2200_v16 = vpop.eup %2199  ;;  %v1398_v33 = vadd.f32 %v2198_v49, %v1397_v30  ;;  %v1922_v30 = vld [vmem:[%s2657_s5 + $0xc8] ss:$0 sm:$0xff] }
 0x76b   :  { %v2202_v35 = vpop.eup %2201 }
 0x76c   :  { %v1402_v23 = vmul.f32 %v2200_v16, %v1398_v33  ;;  %v1422_v32 = vmul.f32 %v2202_v35, %v1421_v14 }
 0x76e   :  { %v2584_v38 = vadd.f32 %v1402_v23, %v1394_v26  ;;  %v1423_v39 = vadd.f32 %v1422_v32, %v1221_v13  ;;  %v1923_v32 = vld [vmem:[%s2660_s6 + $0x58] ss:$0 sm:$0xff] }
 0x770   :  { %2093 = vmatprep.subr.msk.mxu0 %vm1441_vm3, %v1423_v39 }
 0x771   :  { %2094 = vmatpush3.msk.msra.mxu0 %vm1441_vm3, %v1423_v39 }
 0x772   :  { %2096 = vmatmul.mubr.msk.f32.vlgmr.msra.gmra.mrb[16].mxu0 %vm1414_vm14, %v1434_v41 }
 0x845   :  { %v2097_v47 = vpop.f32.mrb[16].mxu0 }
 0x846   :  { %v1511_v48 = vpop.f32.mrb[17].mxu0 }
 0x847   :  { %2100 = vmatprep.mubr.msk.f32.mxu1 %vm1414_vm14, %v1511_v48 }
 0x848   :  { %2101 = vmatmul.mubr.msk.f32.vlgmr.msra.gmra.mrb[12].mxu1 %vm1414_vm14, %v2097_v47 }
 0x849   :  { %2168 = vmatpush3.bf16.msra.mxu1 %v2165_v45  ;;  %2113 = vmatprep.mubr.msk.f32.mxu1 %vm88_vm0, %v2398_v27  ;;  %v62_v27 = vld [vmem:[%s2660_s6 + $0x50] sm:$0xff] }
 0x84a   :  { %2170 = vmatprep.subr.bf16.mxu1 %v2169_v1  ;;  %v2173_v51 = vpack.c.bf16 %v62_v27, %v61_v55 }
 0x84c   :  { %2174 = vmatprep.subr.bf16.mxu0 %v2173_v51 }
 0x84d   :  { %2172 = vmatpush3.bf16.msra.mxu1 %v2169_v1  ;;  %2176 = vmatpush3.bf16.msra.mxu0 %v2173_v51 }
 0x84e   :  { %2111 = vmatprep.subr.msk.mxu1 %vm95_vm1, %v38_v50 }
 0x851   :  { %2112 = vmatpush3.msk.msra.mxu1 %vm95_vm1, %v38_v50 }
 0x852   :  { %2114 = vmatmul.mubr.msk.f32.vlgmr.msra.gmra.mrb[12].mxu1 %vm88_vm0, %v2411_v28  ;;  %vm1406_vm0 = vcmask 9216  }
 0x925   :  { %v2115_v58 = vpop.f32.mrb[12].mxu1 }
 0x926   :  { %v1687_v53 = vadd.f32 %v2115_v58, %v1920_v52  ;;  %v1673_v56 = vpop.f32.mrb[13].mxu1  ;;  %v1910_v58 = vadd.f32 -1.0, %v2584_v38 }
 0x927   :  { %v1686_v57 = vadd.f32 %v1920_v52, %v1673_v56 }
 0x928   :  { %v1689_v28 = vsel %vm180_vm2, %v1687_v53, 0.0  ;;  %v1699_v11 = vmul.f32 %v1687_v53, %v1687_v53 }
 0x929   :  { %v1688_v21 = vsel %vm180_vm2, %v1686_v57, 0.0  ;;  %v1698_v59 = vmul.f32 %v1686_v57, %v1686_v57 }
 0x92a   :  { %v1701_v60 = vsel %vm180_vm2, %v1699_v11, 0.0  ;;  %v1690_v61 = vadd.f32 %v1689_v28, %v1688_v21  ;;  %v1843_v11 = vcvt.s32.f32 %v2353_v8 }
 0x92b   :  { %v1700_v62 = vsel %vm180_vm2, %v1698_v59, 0.0 }
 0x92c   :  { %v1691_v0 = vrot.slane %v1690_v61, 4  ;;  %v1702_v19 = vadd.f32 %v1701_v60, %v1700_v62  ;;  %v1844_v60 = vsub.f32 %v1843_v11, %v2445_v37 }
 0x92e   :  { %v1692_v63 = vadd.f32 %v1691_v0, %v1690_v61  ;;  %v1703_v3 = vrot.slane %v1702_v19, 4  ;;  %v1846_v62 = vand.u32 2147483647, %v1844_v60  ;;  %v1845_v0 = vsub.f32 %v1843_v11, %v2456_v54 }
 0x930   :  { %v1693_v9 = vrot.slane %v1692_v63, 2  ;;  %v1704_v40 = vadd.f32 %v1703_v3, %v1702_v19  ;;  %vm1848_vm1 = vcmp.lt.f32.partialorder %v1846_v62, 0.5  ;;  %v1847_v3 = vand.u32 2147483647, %v1845_v0 }
 0x932   :  { %v1694_v34 = vadd.f32 %v1693_v9, %v1692_v63  ;;  %v1705_v36 = vrot.slane %v1704_v40, 2 }
 0x934   :  { %v1695_v5 = vrot.slane %v1694_v34, 1  ;;  %v1706_v6 = vadd.f32 %v1705_v36, %v1704_v40 }
 0x936   :  { %v1696_v24 = vadd.f32 %v1695_v5, %v1694_v34  ;;  %v1707_v12 = vrot.slane %v1706_v6, 1 }
 0x938   :  { %v1697_v13 = vmul.f32 0.0625, %v1696_v24  ;;  %v1708_v17 = vadd.f32 %v1707_v12, %v1706_v6  ;;  %v1850_v6 = vsel %vm1848_vm1, 1.0, %v2216_v2 }
 0x93a   :  { %v1709_v31 = vmul.f32 0.0625, %v1708_v17  ;;  %v1710_v15 = vmul.f32 %v1697_v13, %v1697_v13  ;;  %v1712_v18 = vsub.f32 %v1686_v57, %v1697_v13  ;;  %v1713_v10 = vsub.f32 %v1687_v53, %v1697_v13 }
 0x93b   :  { %v1405_v53 = vmul.f32 0.5, %v1910_v58 }
 0x93c   :  { %v1711_v22 = vsub.f32 %v1709_v31, %v1710_v15 }
 0x93d   :  { %v1407_v56 = vsel %vm1406_vm0, %v1405_v53, 0.0 }
 0x93e   :  { %v1714_v25 = vadd.f32 1e-05, %v1711_v22  ;;  %v1408_v28 = vrot.slane %v1407_v56, 4 }
 0x940   :  { %2203 = vrsqrt.f32 %v1714_v25  ;;  %v1409_v59 = vadd.f32 %v1408_v28, %v1407_v56 }
 0x942   :  { %v1410_v61 = vrot.slane %v1409_v59, 2 }
 0x944   :  { %v1411_v38 = vadd.f32 %v1410_v61, %v1409_v59 }
 0x946   :  { %v1412_v5 = vrot.slane %v1411_v38, 1 }
 0x948   :  { %v1413_v13 = vadd.f32 %v1412_v5, %v1411_v38 }
 0x94a   :  { %v2204_v26 = vpop.eup %2203  ;;  %v1415_v15 = vsel %vm1414_vm14, %v1413_v13, 0.0 }
 0x94b   :  { %v1716_v7 = vmul.f32 %v2204_v26, %v1712_v18  ;;  %v1717_v29 = vmul.f32 %v2204_v26, %v1713_v10 }
 0x94d   :  { %v1722_v49 = vmul.f32 %v1921_v4, %v1716_v7  ;;  %v1723_v14 = vmul.f32 %v1921_v4, %v1717_v29 }
 0x94f   :  { %v1728_v16 = vadd.f32 %v1922_v30, %v1722_v49  ;;  %v1729_v33 = vadd.f32 %v1922_v30, %v1723_v14 }
 0x951   :  { %v1730_v35 = vmax.f32 %v1728_v16, 0.0  ;;  %v1731_v23 = vmax.f32 %v1729_v33, 0.0 }
 0x953   :  { %2120 = vmatprep.mubr.msk.f32.mxu0 %vm180_vm2, %v1730_v35 }
 0x954   :  { %2121 = vmatmul.mubr.msk.f32.vlgmr.msra.gmra.mrb[18].mxu0 %vm180_vm2, %v1731_v23  ;;  %vm1849_vm2 = vcmp.lt.f32.partialorder %v1847_v3, 0.5 }
 0x955   :  { %v1851_v54 = vsel %vm1849_vm2, 1.0, %v2216_v2 }
 0xa27   :  { %v2122_v39 = vpop.f32.mrb[18].mxu0 }
 0xa28   :  { %v1814_v41 = vadd.f32 %v2122_v39, %v1923_v32  ;;  %v1808_v42 = vpop.f32.mrb[19].mxu0 }
 0xa29   :  { %v1809_v43 = vadd.f32 %v1923_v32, %v1808_v42 }
 0xa2a   :  { %v1820_v44 = vsel %vm1414_vm14, %v1814_v41, -inf }
 0xa2b   :  { %1821 = vmax.xlane.f32.xlu1 %v1820_v44  ;;  %v1817_v45 = vsel %vm1414_vm14, %v1809_v43, -inf }
 0xa2c   :  { %1818 = vmax.xlane.f32.xlu0 %v1817_v45 }
 0xab8   :  { %v1822_v46 = vpop.xlane.xlu1 %1821 }
 0xab9   :  { %v1824_v20 = vsub.f32 %v1814_v41, %v1822_v46  ;;  %v1819_v47 = vpop.xlane.xlu0 %1818 }
 0xaba   :  { %v1823_v48 = vsub.f32 %v1809_v43, %v1819_v47 }
 0xabb   :  { %v1827_v1 = vmul.f32 1.442695, %v1824_v20 }
 0xabc   :  { %v1825_v50 = vmul.f32 1.442695, %v1823_v48 }
 0xabe   :  { %2205 = vpow2.f32 %v1825_v50 }
 0xabf   :  { %2207 = vpow2.f32 %v1827_v1 }
 0xac8   :  { %v2206_v55 = vpop.eup %2205 }
 0xac9   :  { %v1829_v27 = vsel %vm1414_vm14, %v2206_v55, 0.0  ;;  %v2208_v51 = vpop.eup %2207 }
 0xaca   :  { %1830 = vadd.xlane.f32.xlu0 %v1829_v27  ;;  %v1832_v52 = vsel %vm1414_vm14, %v2208_v51, 0.0 }
 0xace   :  { %1833 = vadd.xlane.f32.xlu0 %v1832_v52 }
 0xb57   :  { %v1831_v57 = vpop.xlane.xlu0 %1830 }
 0xb58   :  { %2209 = vlog2.f32 %v1831_v57 }
 0xb5b   :  { %v1834_v21 = vpop.xlane.xlu0 %1833 }
 0xb5c   :  { %2211 = vlog2.f32 %v1834_v21 }
 0xb62   :  { %v2210_v19 = vpop.eup %2209 }
 0xb63   :  { %v1836_v63 = vmul.f32 0.6931472, %v2210_v19 }
 0xb65   :  { %v1839_v9 = vadd.f32 %v1836_v63, %v1819_v47 }
 0xb66   :  { %v2212_v40 = vpop.eup %2211 }
 0xb67   :  { %v1838_v34 = vmul.f32 0.6931472, %v2212_v40  ;;  %v1841_v36 = vsub.f32 %v1809_v43, %v1839_v9 }
 0xb69   :  { %v1840_v24 = vadd.f32 %v1838_v34, %v1822_v46  ;;  %v1852_v12 = vmul.f32 %v1850_v6, %v1841_v36 }
 0xb6b   :  { %v1854_v37 = vsel %vm1414_vm14, %v1852_v12, 0.0  ;;  %v1842_v17 = vsub.f32 %v1814_v41, %v1840_v24 }
 0xb6c   :  { %1855 = vadd.xlane.f32.xlu1 %v1854_v37 }
 0xb6d   :  { %v1853_v31 = vmul.f32 %v1851_v54, %v1842_v17 }
 0xb6f   :  { %v1857_v18 = vsel %vm1414_vm14, %v1853_v31, 0.0 }
 0xb70   :  { %1416 = vadd.xlane.f32.xlu1 %v1415_v15  ;;  %1858 = vadd.xlane.f32.xlu0 %v1857_v18 }
 0xbf9   :  { %v1856_v10 = vpop.xlane.xlu1 %1855 }
 0xbfd   :  { %v1859_v22 = vpop.xlane.xlu0 %1858  ;;  %v1417_v16 = vpop.xlane.xlu1 %1416 }
 0xbfe   :  { %v1860_v25 = vadd.f32 %v1859_v22, %v1856_v10 }
 0xc00   :  { %v1861_v26 = vrot.slane %v1860_v25, 4 }
 0xc02   :  { %v1862_v4 = vadd.f32 %v1861_v26, %v1860_v25 }
 0xc04   :  { %v1863_v7 = vrot.slane %v1862_v4, 2 }
 0xc06   :  { %v1864_v29 = vadd.f32 %v1863_v7, %v1862_v4 }
 0xc08   :  { %v1865_v30 = vrot.slane %v1864_v29, 1 }
 0xc0a   :  { %v1866_v49 = vadd.f32 %v1865_v30, %v1864_v29 }
 0xc0c   :  { %v1867_v14 = vsub.f32 0.0, %v1866_v49 }
 0xc0e   :  { %v1868_v2 = vmul.f32 0.0625, %v1867_v14 }
 0xc10   :  { %v1870_v33 = vsel %vm1869_vm4, %v1868_v2, %v1417_v16 }
 0xc11   :  { %1872 = vst.msk [vmem:[%s2664_s7] sm:$0x1] %vm1871_vm5, %v1870_v33 }

</bundles_post_ra>
